<compile_context>
chip_gen: v6e
topology: v6e:2x2x1
jax: 0.10.0
libtpu: 0.0.40
codegen_flags: <defaults>
</compile_context>

<pallas_src>
import functools

import jax
import jax.numpy as jnp
from jax.experimental import pallas as pl
from jax.experimental.pallas import tpu as pltpu

# Sized against v7x's 64 MiB physical VMEM (also valid on v5e/v6e).
_VMEM_LIMIT = 48 * 1024 * 1024


def _largest_divisor_leq(n, cap):
    cap = max(1, min(n, cap))
    for d in range(cap, 0, -1):
        if n % d == 0:
            return d
    return 1


# ----------------------------------------------------------------------------
# Kernel 1: fused patch-conv (kernel == stride == patch)
#   out[n, ho, wo, :] = silu( sum_dy x[n, ho*p+dy, wo*p:(wo+1)*p, :] @ w[dy] + b )
# Weights / bias are VMEM-resident across the whole grid; both grid axes are
# "parallel" so v7x's two TensorCores split the work.
# ----------------------------------------------------------------------------
def _patch_conv_kernel(x_ref, w_ref, b_ref, o_ref, *, patch, pc):
    # x_ref: (1, TILE_HO, patch, Wo, patch*C)  bf16
    # w_ref: (patch*patch*C, Nout)             bf16  (rows ordered (dy, dx, c))
    # b_ref: (1, Nout)                         f32
    # o_ref: (1, TILE_HO, Wo, Nout)            bf16
    tile_ho = x_ref.shape[1]
    bias = b_ref[...]                                   # hoisted, f32
    for t in range(tile_ho):                            # small static unroll
        acc = jnp.dot(x_ref[0, t, 0], w_ref[0:pc, :],
                      preferred_element_type=jnp.float32)
        for dy in range(1, patch):
            acc += jnp.dot(x_ref[0, t, dy], w_ref[dy * pc:(dy + 1) * pc, :],
                           preferred_element_type=jnp.float32)
        acc += bias
        acc = acc * jax.nn.sigmoid(acc)                 # SiLU in f32 (EUP)
        o_ref[0, t] = acc.astype(o_ref.dtype)           # cast only on store


def fused_patch_conv(x_nhwc, w, b, patch):
    """x: (N, H, W, C) bf16, w: (patch*patch*C, Nout) bf16, b: (1, Nout) f32
    -> (N, H/patch, W/patch, Nout) bf16.  Nout is lane-padded to 128."""
    Nb, H, W, C = x_nhwc.shape
    assert H % patch == 0 and W % patch == 0
    Ho, Wo = H // patch, W // patch
    pc = patch * C
    K, Nout = w.shape
    assert K == patch * pc and b.shape == (1, Nout)

    xr = x_nhwc.reshape(Nb, Ho, patch, Wo, pc)          # free row-major reflow
    # ~512 output rows per grid step, capped so the static unroll stays small.
    tile_ho = _largest_divisor_leq(Ho, min(max(1, 512 // max(Wo, 1)), 16))

    kernel = functools.partial(_patch_conv_kernel, patch=patch, pc=pc)
    flops = 2 * Nb * Ho * Wo * K * Nout
    bytes_accessed = (xr.size * xr.dtype.itemsize + w.size * w.dtype.itemsize
                      + b.size * 4 + Nb * Ho * Wo * Nout * 2)
    return pl.pallas_call(
        kernel,
        out_shape=jax.ShapeDtypeStruct((Nb, Ho, Wo, Nout), jnp.bfloat16),
        grid=(Nb, Ho // tile_ho),
        in_specs=[
            pl.BlockSpec((1, tile_ho, patch, Wo, pc), lambda n, t: (n, t, 0, 0, 0)),
            pl.BlockSpec((K, Nout), lambda n, t: (0, 0)),      # resident weights
            pl.BlockSpec((1, Nout), lambda n, t: (0, 0)),      # resident bias
        ],
        out_specs=pl.BlockSpec((1, tile_ho, Wo, Nout), lambda n, t: (n, t, 0, 0)),
        compiler_params=pltpu.CompilerParams(
            dimension_semantics=("parallel", "parallel"),
            vmem_limit_bytes=_VMEM_LIMIT),
        cost_estimate=pl.CostEstimate(
            flops=flops, transcendentals=Nb * Ho * Wo * Nout,
            bytes_accessed=bytes_accessed),
    )(xr, w, b)


# ----------------------------------------------------------------------------
# Kernel 2: head 1x1 conv + SiLU + global average pool, fused.
# Output block index is constant along the S axis -> VMEM-resident accumulator
# (init at s==0, normalize at the last step).
# ----------------------------------------------------------------------------
def _head_pool_kernel(x_ref, w_ref, b_ref, o_ref, *, total_rows, ragged):
    # x_ref: (1, TILE_S, C) bf16 ; w_ref: (C, Cout) bf16 ; b_ref: (1, Cout) f32
    # o_ref: (1, Cout) f32 accumulator
    s = pl.program_id(1)

    @pl.when(s == 0)
    def _():
        o_ref[...] = jnp.zeros_like(o_ref)

    y = jnp.dot(x_ref[0], w_ref[...], preferred_element_type=jnp.float32)
    y = y + b_ref[...]
    y = y * jax.nn.sigmoid(y)                           # SiLU in f32
    if ragged:                                          # mask padded rows of last tile
        tile_s = x_ref.shape[1]
        row = s * tile_s + jax.lax.broadcasted_iota(jnp.int32, (tile_s, 1), 0)
        y = jnp.where(row < total_rows, y, 0.0)
    o_ref[...] += jnp.sum(y, axis=0, keepdims=True)

    @pl.when(s == pl.num_programs(1) - 1)
    def _():
        o_ref[...] = o_ref[...] * (1.0 / total_rows)


def head_pool_matmul(x_nsc, w, b):
    """x: (N, S, C) bf16 -> z: (N, Cout) f32.  Equivalent to
    silu(x @ w + b) followed by AdaptiveAvgPool2d(1) + flatten."""
    Nb, S, C = x_nsc.shape
    C2, Cout = w.shape
    assert C == C2
    tile_s = min(S, 512)
    kernel = functools.partial(_head_pool_kernel, total_rows=S,
                               ragged=(S % tile_s != 0))
    flops = 2 * Nb * S * C * Cout
    bytes_accessed = Nb * S * C * 2 + w.size * 2 + b.size * 4 + Nb * Cout * 4
    return pl.pallas_call(
        kernel,
        out_shape=jax.ShapeDtypeStruct((Nb, Cout), jnp.float32),
        grid=(Nb, pl.cdiv(S, tile_s)),
        in_specs=[
            pl.BlockSpec((1, tile_s, C), lambda n, s: (n, s, 0)),
            pl.BlockSpec((C, Cout), lambda n, s: (0, 0)),
            pl.BlockSpec((1, Cout), lambda n, s: (0, 0)),
        ],
        out_specs=pl.BlockSpec((1, Cout), lambda n, s: (n, 0)),
        compiler_params=pltpu.CompilerParams(
            dimension_semantics=("parallel", "arbitrary"),
            vmem_limit_bytes=_VMEM_LIMIT),
        cost_estimate=pl.CostEstimate(
            flops=flops, transcendentals=Nb * S * Cout,
            bytes_accessed=bytes_accessed),
    )(x_nsc, w, b)


# ----------------------------------------------------------------------------
# Synthetic backbone (stand-in for the external EfficientNet `body`)
# TODO(synk): the real EfficientNet body is an external nn.Module; this
# deterministic Pallas patch-conv trunk stands in for it.
# ----------------------------------------------------------------------------
class SyntheticBackbone:
    """Produces 'reduction_3' (stride 8, 40 ch) and 'reduction_4' (stride 16,
    112 ch) endpoints.  Channels are padded to 128 lanes internally; the extra
    weight columns/rows and bias entries are zero, so padded activation
    channels are exactly silu(0) = 0 and real-channel results are unchanged."""

    C3_REAL, C4_REAL, C_PAD = 40, 112, 128

    def __init__(self, in_channels, feature_channels, key):
        k1, k2, k3 = jax.random.split(key, 3)
        cp = self.C_PAD
        # layer 1: patch 8, Cin -> 40 (output padded to 128)
        w3r = jax.random.normal(k1, (8 * 8 * in_channels, self.C3_REAL), jnp.float32) * 0.05
        w3 = jnp.zeros((8 * 8 * in_channels, cp), jnp.float32).at[:, :self.C3_REAL].set(w3r)
        # layer 2: patch 2, 40 -> 112 (both sides padded to 128)
        w4r = jax.random.normal(k2, (2, 2, self.C3_REAL, self.C4_REAL), jnp.float32) * 0.05
        w4 = jnp.zeros((2, 2, cp, cp), jnp.float32)
        w4 = w4.at[:, :, :self.C3_REAL, :self.C4_REAL].set(w4r).reshape(2 * 2 * cp, cp)
        # head: 1x1, 112 -> feature_channels
        whr = jax.random.normal(k3, (self.C4_REAL, feature_channels), jnp.float32) * 0.05
        wh = jnp.zeros((cp, feature_channels), jnp.float32).at[:self.C4_REAL, :].set(whr)

        self.w3 = w3.astype(jnp.bfloat16)
        self.w4 = w4.astype(jnp.bfloat16)
        self.wh = wh.astype(jnp.bfloat16)
        self.b3 = jnp.zeros((1, cp), jnp.float32)
        self.b4 = jnp.zeros((1, cp), jnp.float32)
        self.bh = jnp.zeros((1, feature_channels), jnp.float32)
        self.feature_channels = feature_channels

    def _trunk(self, img_nchw):
        # single NCHW -> NHWC transpose at the input boundary, bf16 thereafter
        x = jnp.transpose(img_nchw, (0, 2, 3, 1)).astype(jnp.bfloat16)
        r3 = fused_patch_conv(x, self.w3, self.b3, patch=8)    # (N, H/8,  W/8,  128)
        r4 = fused_patch_conv(r3, self.w4, self.b4, patch=2)   # (N, H/16, W/16, 128)
        return r3, r4

    def extract_endpoints(self, img_nchw):
        r3, r4 = self._trunk(img_nchw)
        return {"reduction_3": r3, "reduction_4": r4}          # padded NHWC bf16

    def extract_features_pooled(self, img_nchw):
        # head 1x1 conv + SiLU + global mean fused into one kernel
        _, r4 = self._trunk(img_nchw)
        Nb, H4, W4, C = r4.shape
        return head_pool_matmul(r4.reshape(Nb, H4 * W4, C), self.wh, self.bh)


# ----------------------------------------------------------------------------
# BackboneBase (JAX/Pallas version of the PyTorch module)
# ----------------------------------------------------------------------------
def _interpolate_mask_nearest(mask, size):
    """F.interpolate(m[None].float(), size=size).to(torch.bool)[0]
    (mode='nearest': src = floor(dst * in/out)).  Pure gather glue."""
    N, H, W = mask.shape
    h, w = size
    ih = (jnp.arange(h) * H) // h
    iw = (jnp.arange(w) * W) // w
    return mask[:, ih][:, :, iw]


class BackboneBase:
    def __init__(self, backbone, reductions):
        self.body = backbone
        self.reductions = reductions
        self.reduction_map = {"reduction_3": 40, "reduction_4": 112}
        self.num_channels = [self.reduction_map[r] for r in self.reductions]

    def forward(self, tensors, mask):
        """tensors: (N, Cin, H, W) f32, mask: (N, H, W) bool.
        Returns dict name -> (features NCHW f32 with real channel counts,
        resized bool mask)  (== NestedTensor)."""
        xs = self.body.extract_endpoints(tensors)      # padded NHWC bf16
        out = {}
        for name in self.reductions:
            c_real = self.reduction_map[name]
            x = xs[name][..., :c_real]                 # drop lane padding
            x = jnp.transpose(x, (0, 3, 1, 2)).astype(jnp.float32)  # boundary only
            assert mask is not None
            m = _interpolate_mask_nearest(mask, x.shape[-2:])
            out[name] = (x, m)
        return out

    def forward_backbone(self, img):
        """img: (N, Cin, H, W) -> z: (N, Cout).  AdaptiveAvgPool2d(1) + flatten
        is fused into the head matmul kernel (global spatial mean)."""
        return self.body.extract_features_pooled(img)


# ----------------------------------------------------------------------------
# Plain-JAX reference (mirrors the bf16-in / f32-accumulate pipeline)
# ----------------------------------------------------------------------------
def _ref_patch_conv(x, w, b, patch):
    Nb, H, W, C = x.shape
    Ho, Wo = H // patch, W // patch
    cols = x.reshape(Nb, Ho, patch, Wo, patch, C).transpose(0, 1, 3, 2, 4, 5)
    cols = cols.reshape(Nb * Ho * Wo, patch * patch * C)
    y = jnp.dot(cols, w, preferred_element_type=jnp.float32) + b
    y = y * jax.nn.sigmoid(y)
    return y.reshape(Nb, Ho, Wo, w.shape[1]).astype(jnp.bfloat16)


if __name__ == "__main__":
    key = jax.random.PRNGKey(0)
    k_img, k_params = jax.random.split(key)

    N, Cin, H, W = 2, 4, 32, 32
    img = jax.random.normal(k_img, (N, Cin, H, W), jnp.float32)
    # DETR-style padding mask: True in the (padded) rightmost quarter
    mask = jnp.broadcast_to(jnp.arange(W)[None, None, :] >= (3 * W // 4), (N, H, W))

    backbone = SyntheticBackbone(Cin, feature_channels=128, key=k_params)
    model = BackboneBase(backbone, reductions=["reduction_3", "reduction_4"])

    out = model.forward(img, mask)
    z = model.forward_backbone(img)
    jax.block_until_ready(z)
    for _, (feat, m) in out.items():
        jax.block_until_ready(feat)
        jax.block_until_ready(m)

    # shape / dtype checks (match PyTorch semantics)
    assert out["reduction_3"][0].shape == (N, 40, H // 8, W // 8)
    assert out["reduction_4"][0].shape == (N, 112, H // 16, W // 16)
    assert out["reduction_3"][1].shape == (N, H // 8, W // 8)
    assert out["reduction_3"][1].dtype == jnp.bool_
    assert z.shape == (N, 128) and z.dtype == jnp.float32

    # numerical check of the Pallas kernels against plain JAX
    x0 = jnp.transpose(img, (0, 2, 3, 1)).astype(jnp.bfloat16)
    r3_ref = _ref_patch_conv(x0, backbone.w3, backbone.b3, 8)
    r4_ref = _ref_patch_conv(r3_ref, backbone.w4, backbone.b4, 2)
    yh = jnp.dot(r4_ref.reshape(N, -1, 128), backbone.wh,
                 preferred_element_type=jnp.float32) + backbone.bh
    yh = yh * jax.nn.sigmoid(yh)
    z_ref = jnp.mean(yh, axis=1)

    assert jnp.allclose(z, z_ref, atol=2e-2, rtol=2e-2)
    r3_ref_nchw = jnp.transpose(r3_ref[..., :40], (0, 3, 1, 2)).astype(jnp.float32)
    r4_ref_nchw = jnp.transpose(r4_ref[..., :112], (0, 3, 1, 2)).astype(jnp.float32)
    assert jnp.allclose(out["reduction_3"][0], r3_ref_nchw, atol=2e-2, rtol=2e-2)
    assert jnp.allclose(out["reduction_4"][0], r4_ref_nchw, atol=2e-2, rtol=2e-2)
    # lane-padded channels must stay exactly zero inside the trunk
    eps = backbone.extract_endpoints(img)
    assert jnp.all(eps["reduction_3"][..., 40:] == 0)

    print("KERNEL_OK")
</pallas_src>

<mosaic_0001>
module attributes {stable_mosaic.version = 11 : i64} {
  func.func @_patch_conv_kernel(%arg0: i32, %arg1: i32, %arg2: memref<1x4x8x4x32xbf16, #tpu.memory_space<vmem>>, %arg3: memref<256x128xbf16, #tpu.memory_space<vmem>>, %arg4: memref<1x128xf32, #tpu.memory_space<vmem>>, %arg5: memref<1x4x4x128xbf16, #tpu.memory_space<vmem>>) attributes {dimension_semantics = [#tpu.dimension_semantics<parallel>, #tpu.dimension_semantics<parallel>], iteration_bounds = array<i64: 2, 1>, scalar_prefetch = 0 : i64, scratch_operands = 0 : i64, tpu.core_type = #tpu.core_type<tc>, window_params = [{transform_indices = @transform_0, window_bounds = array<i64: 1, 4, 8, 4, 32>}, {pipeline_mode = #tpu.pipeline_mode<synchronous>, transform_indices = @transform_1, window_bounds = array<i64: 256, 128>}, {pipeline_mode = #tpu.pipeline_mode<synchronous>, transform_indices = @transform_2, window_bounds = array<i64: 1, 128>}, {transform_indices = @transform_3, window_bounds = array<i64: 1, 4, 4, 128>}]} {
    %c0 = arith.constant 0 : index
    %c0_0 = arith.constant 0 : index
    %0 = vector.load %arg4[%c0, %c0_0] : memref<1x128xf32, #tpu.memory_space<vmem>>, vector<1x128xf32>
    %c0_1 = arith.constant 0 : index
    %c0_2 = arith.constant 0 : index
    %c0_3 = arith.constant 0 : index
    %c0_4 = arith.constant 0 : index
    %c0_5 = arith.constant 0 : index
    %1 = vector.load %arg2[%c0_1, %c0_2, %c0_3, %c0_4, %c0_5] : memref<1x4x8x4x32xbf16, #tpu.memory_space<vmem>>, vector<1x1x1x4x32xbf16>
    %2 = vector.shape_cast %1 : vector<1x1x1x4x32xbf16> to vector<4x32xbf16>
    %c0_6 = arith.constant 0 : index
    %c0_7 = arith.constant 0 : index
    %3 = vector.load %arg3[%c0_6, %c0_7] : memref<256x128xbf16, #tpu.memory_space<vmem>>, vector<32x128xbf16>
    %cst = arith.constant dense<0.000000e+00> : vector<4x128xf32>
    %4 = tpu.matmul %2, %3, %cst {dimension_numbers = #tpu.dot_dimension_numbers<[1], [0], [0], [1], [0, 0, 1, 1], [], []>} : vector<4x32xbf16>, vector<32x128xbf16>, vector<4x128xf32> -> vector<4x128xf32>
    %c0_8 = arith.constant 0 : index
    %c0_9 = arith.constant 0 : index
    %c1 = arith.constant 1 : index
    %c0_10 = arith.constant 0 : index
    %c0_11 = arith.constant 0 : index
    %5 = vector.load %arg2[%c0_8, %c0_9, %c1, %c0_10, %c0_11] : memref<1x4x8x4x32xbf16, #tpu.memory_space<vmem>>, vector<1x1x1x4x32xbf16>
    %6 = vector.shape_cast %5 : vector<1x1x1x4x32xbf16> to vector<4x32xbf16>
    %c32 = arith.constant 32 : index
    %c0_12 = arith.constant 0 : index
    %7 = vector.load %arg3[%c32, %c0_12] : memref<256x128xbf16, #tpu.memory_space<vmem>>, vector<32x128xbf16>
    %cst_13 = arith.constant dense<0.000000e+00> : vector<4x128xf32>
    %8 = tpu.matmul %6, %7, %cst_13 {dimension_numbers = #tpu.dot_dimension_numbers<[1], [0], [0], [1], [0, 0, 1, 1], [], []>} : vector<4x32xbf16>, vector<32x128xbf16>, vector<4x128xf32> -> vector<4x128xf32>
    %9 = arith.addf %4, %8 : vector<4x128xf32>
    %c0_14 = arith.constant 0 : index
    %c0_15 = arith.constant 0 : index
    %c2 = arith.constant 2 : index
    %c0_16 = arith.constant 0 : index
    %c0_17 = arith.constant 0 : index
    %10 = vector.load %arg2[%c0_14, %c0_15, %c2, %c0_16, %c0_17] : memref<1x4x8x4x32xbf16, #tpu.memory_space<vmem>>, vector<1x1x1x4x32xbf16>
    %11 = vector.shape_cast %10 : vector<1x1x1x4x32xbf16> to vector<4x32xbf16>
    %c64 = arith.constant 64 : index
    %c0_18 = arith.constant 0 : index
    %12 = vector.load %arg3[%c64, %c0_18] : memref<256x128xbf16, #tpu.memory_space<vmem>>, vector<32x128xbf16>
    %cst_19 = arith.constant dense<0.000000e+00> : vector<4x128xf32>
    %13 = tpu.matmul %11, %12, %cst_19 {dimension_numbers = #tpu.dot_dimension_numbers<[1], [0], [0], [1], [0, 0, 1, 1], [], []>} : vector<4x32xbf16>, vector<32x128xbf16>, vector<4x128xf32> -> vector<4x128xf32>
    %14 = arith.addf %9, %13 : vector<4x128xf32>
    %c0_20 = arith.constant 0 : index
    %c0_21 = arith.constant 0 : index
    %c3 = arith.constant 3 : index
    %c0_22 = arith.constant 0 : index
    %c0_23 = arith.constant 0 : index
    %15 = vector.load %arg2[%c0_20, %c0_21, %c3, %c0_22, %c0_23] : memref<1x4x8x4x32xbf16, #tpu.memory_space<vmem>>, vector<1x1x1x4x32xbf16>
    %16 = vector.shape_cast %15 : vector<1x1x1x4x32xbf16> to vector<4x32xbf16>
    %c96 = arith.constant 96 : index
    %c0_24 = arith.constant 0 : index
    %17 = vector.load %arg3[%c96, %c0_24] : memref<256x128xbf16, #tpu.memory_space<vmem>>, vector<32x128xbf16>
    %cst_25 = arith.constant dense<0.000000e+00> : vector<4x128xf32>
    %18 = tpu.matmul %16, %17, %cst_25 {dimension_numbers = #tpu.dot_dimension_numbers<[1], [0], [0], [1], [0, 0, 1, 1], [], []>} : vector<4x32xbf16>, vector<32x128xbf16>, vector<4x128xf32> -> vector<4x128xf32>
    %19 = arith.addf %14, %18 : vector<4x128xf32>
    %c0_26 = arith.constant 0 : index
    %c0_27 = arith.constant 0 : index
    %c4 = arith.constant 4 : index
    %c0_28 = arith.constant 0 : index
    %c0_29 = arith.constant 0 : index
    %20 = vector.load %arg2[%c0_26, %c0_27, %c4, %c0_28, %c0_29] : memref<1x4x8x4x32xbf16, #tpu.memory_space<vmem>>, vector<1x1x1x4x32xbf16>
    %21 = vector.shape_cast %20 : vector<1x1x1x4x32xbf16> to vector<4x32xbf16>
    %c128 = arith.constant 128 : index
    %c0_30 = arith.constant 0 : index
    %22 = vector.load %arg3[%c128, %c0_30] : memref<256x128xbf16, #tpu.memory_space<vmem>>, vector<32x128xbf16>
    %cst_31 = arith.constant dense<0.000000e+00> : vector<4x128xf32>
    %23 = tpu.matmul %21, %22, %cst_31 {dimension_numbers = #tpu.dot_dimension_numbers<[1], [0], [0], [1], [0, 0, 1, 1], [], []>} : vector<4x32xbf16>, vector<32x128xbf16>, vector<4x128xf32> -> vector<4x128xf32>
    %24 = arith.addf %19, %23 : vector<4x128xf32>
    %c0_32 = arith.constant 0 : index
    %c0_33 = arith.constant 0 : index
    %c5 = arith.constant 5 : index
    %c0_34 = arith.constant 0 : index
    %c0_35 = arith.constant 0 : index
    %25 = vector.load %arg2[%c0_32, %c0_33, %c5, %c0_34, %c0_35] : memref<1x4x8x4x32xbf16, #tpu.memory_space<vmem>>, vector<1x1x1x4x32xbf16>
    %26 = vector.shape_cast %25 : vector<1x1x1x4x32xbf16> to vector<4x32xbf16>
    %c160 = arith.constant 160 : index
    %c0_36 = arith.constant 0 : index
    %27 = vector.load %arg3[%c160, %c0_36] : memref<256x128xbf16, #tpu.memory_space<vmem>>, vector<32x128xbf16>
    %cst_37 = arith.constant dense<0.000000e+00> : vector<4x128xf32>
    %28 = tpu.matmul %26, %27, %cst_37 {dimension_numbers = #tpu.dot_dimension_numbers<[1], [0], [0], [1], [0, 0, 1, 1], [], []>} : vector<4x32xbf16>, vector<32x128xbf16>, vector<4x128xf32> -> vector<4x128xf32>
    %29 = arith.addf %24, %28 : vector<4x128xf32>
    %c0_38 = arith.constant 0 : index
    %c0_39 = arith.constant 0 : index
    %c6 = arith.constant 6 : index
    %c0_40 = arith.constant 0 : index
    %c0_41 = arith.constant 0 : index
    %30 = vector.load %arg2[%c0_38, %c0_39, %c6, %c0_40, %c0_41] : memref<1x4x8x4x32xbf16, #tpu.memory_space<vmem>>, vector<1x1x1x4x32xbf16>
    %31 = vector.shape_cast %30 : vector<1x1x1x4x32xbf16> to vector<4x32xbf16>
    %c192 = arith.constant 192 : index
    %c0_42 = arith.constant 0 : index
    %32 = vector.load %arg3[%c192, %c0_42] : memref<256x128xbf16, #tpu.memory_space<vmem>>, vector<32x128xbf16>
    %cst_43 = arith.constant dense<0.000000e+00> : vector<4x128xf32>
    %33 = tpu.matmul %31, %32, %cst_43 {dimension_numbers = #tpu.dot_dimension_numbers<[1], [0], [0], [1], [0, 0, 1, 1], [], []>} : vector<4x32xbf16>, vector<32x128xbf16>, vector<4x128xf32> -> vector<4x128xf32>
    %34 = arith.addf %29, %33 : vector<4x128xf32>
    %c0_44 = arith.constant 0 : index
    %c0_45 = arith.constant 0 : index
    %c7 = arith.constant 7 : index
    %c0_46 = arith.constant 0 : index
    %c0_47 = arith.constant 0 : index
    %35 = vector.load %arg2[%c0_44, %c0_45, %c7, %c0_46, %c0_47] : memref<1x4x8x4x32xbf16, #tpu.memory_space<vmem>>, vector<1x1x1x4x32xbf16>
    %36 = vector.shape_cast %35 : vector<1x1x1x4x32xbf16> to vector<4x32xbf16>
    %c224 = arith.constant 224 : index
    %c0_48 = arith.constant 0 : index
    %37 = vector.load %arg3[%c224, %c0_48] : memref<256x128xbf16, #tpu.memory_space<vmem>>, vector<32x128xbf16>
    %cst_49 = arith.constant dense<0.000000e+00> : vector<4x128xf32>
    %38 = tpu.matmul %36, %37, %cst_49 {dimension_numbers = #tpu.dot_dimension_numbers<[1], [0], [0], [1], [0, 0, 1, 1], [], []>} : vector<4x32xbf16>, vector<32x128xbf16>, vector<4x128xf32> -> vector<4x128xf32>
    %39 = arith.addf %34, %38 : vector<4x128xf32>
    %40 = vector.broadcast %0 : vector<1x128xf32> to vector<4x128xf32>
    %41 = arith.addf %39, %40 : vector<4x128xf32>
    %42 = arith.negf %41 : vector<4x128xf32>
    %43 = math.exp %42 : vector<4x128xf32>
    %cst_50 = arith.constant 1.000000e+00 : f32
    %44 = vector.broadcast %cst_50 : f32 to vector<4x128xf32>
    %45 = arith.addf %44, %43 : vector<4x128xf32>
    %46 = arith.divf %44, %45 : vector<4x128xf32>
    %47 = arith.mulf %41, %46 : vector<4x128xf32>
    %48 = arith.truncf %47 : vector<4x128xf32> to vector<4x128xbf16>
    %c0_51 = arith.constant 0 : index
    %c0_52 = arith.constant 0 : index
    %c0_53 = arith.constant 0 : index
    %c0_54 = arith.constant 0 : index
    %49 = vector.load %arg5[%c0_51, %c0_52, %c0_53, %c0_54] : memref<1x4x4x128xbf16, #tpu.memory_space<vmem>>, vector<1x1x4x128xbf16>
    %50 = vector.shape_cast %49 : vector<1x1x4x128xbf16> to vector<4x128xbf16>
    %51 = vector.shape_cast %48 : vector<4x128xbf16> to vector<1x1x4x128xbf16>
    tpu.vector_store %arg5[%c0_51, %c0_52, %c0_53, %c0_54], %51 {strides = array<i32>} : memref<1x4x4x128xbf16, #tpu.memory_space<vmem>>, vector<1x1x4x128xbf16>,
    %c0_55 = arith.constant 0 : index
    %c1_56 = arith.constant 1 : index
    %c0_57 = arith.constant 0 : index
    %c0_58 = arith.constant 0 : index
    %c0_59 = arith.constant 0 : index
    %52 = vector.load %arg2[%c0_55, %c1_56, %c0_57, %c0_58, %c0_59] : memref<1x4x8x4x32xbf16, #tpu.memory_space<vmem>>, vector<1x1x1x4x32xbf16>
    %53 = vector.shape_cast %52 : vector<1x1x1x4x32xbf16> to vector<4x32xbf16>
    %c0_60 = arith.constant 0 : index
    %c0_61 = arith.constant 0 : index
    %54 = vector.load %arg3[%c0_60, %c0_61] : memref<256x128xbf16, #tpu.memory_space<vmem>>, vector<32x128xbf16>
    %cst_62 = arith.constant dense<0.000000e+00> : vector<4x128xf32>
    %55 = tpu.matmul %53, %54, %cst_62 {dimension_numbers = #tpu.dot_dimension_numbers<[1], [0], [0], [1], [0, 0, 1, 1], [], []>} : vector<4x32xbf16>, vector<32x128xbf16>, vector<4x128xf32> -> vector<4x128xf32>
    %c0_63 = arith.constant 0 : index
    %c1_64 = arith.constant 1 : index
    %c1_65 = arith.constant 1 : index
    %c0_66 = arith.constant 0 : index
    %c0_67 = arith.constant 0 : index
    %56 = vector.load %arg2[%c0_63, %c1_64, %c1_65, %c0_66, %c0_67] : memref<1x4x8x4x32xbf16, #tpu.memory_space<vmem>>, vector<1x1x1x4x32xbf16>
    %57 = vector.shape_cast %56 : vector<1x1x1x4x32xbf16> to vector<4x32xbf16>
    %c32_68 = arith.constant 32 : index
    %c0_69 = arith.constant 0 : index
    %58 = vector.load %arg3[%c32_68, %c0_69] : memref<256x128xbf16, #tpu.memory_space<vmem>>, vector<32x128xbf16>
    %cst_70 = arith.constant dense<0.000000e+00> : vector<4x128xf32>
    %59 = tpu.matmul %57, %58, %cst_70 {dimension_numbers = #tpu.dot_dimension_numbers<[1], [0], [0], [1], [0, 0, 1, 1], [], []>} : vector<4x32xbf16>, vector<32x128xbf16>, vector<4x128xf32> -> vector<4x128xf32>
    %60 = arith.addf %55, %59 : vector<4x128xf32>
    %c0_71 = arith.constant 0 : index
    %c1_72 = arith.constant 1 : index
    %c2_73 = arith.constant 2 : index
    %c0_74 = arith.constant 0 : index
    %c0_75 = arith.constant 0 : index
    %61 = vector.load %arg2[%c0_71, %c1_72, %c2_73, %c0_74, %c0_75] : memref<1x4x8x4x32xbf16, #tpu.memory_space<vmem>>, vector<1x1x1x4x32xbf16>
    %62 = vector.shape_cast %61 : vector<1x1x1x4x32xbf16> to vector<4x32xbf16>
    %c64_76 = arith.constant 64 : index
    %c0_77 = arith.constant 0 : index
    %63 = vector.load %arg3[%c64_76, %c0_77] : memref<256x128xbf16, #tpu.memory_space<vmem>>, vector<32x128xbf16>
    %cst_78 = arith.constant dense<0.000000e+00> : vector<4x128xf32>
    %64 = tpu.matmul %62, %63, %cst_78 {dimension_numbers = #tpu.dot_dimension_numbers<[1], [0], [0], [1], [0, 0, 1, 1], [], []>} : vector<4x32xbf16>, vector<32x128xbf16>, vector<4x128xf32> -> vector<4x128xf32>
    %65 = arith.addf %60, %64 : vector<4x128xf32>
    %c0_79 = arith.constant 0 : index
    %c1_80 = arith.constant 1 : index
    %c3_81 = arith.constant 3 : index
    %c0_82 = arith.constant 0 : index
    %c0_83 = arith.constant 0 : index
    %66 = vector.load %arg2[%c0_79, %c1_80, %c3_81, %c0_82, %c0_83] : memref<1x4x8x4x32xbf16, #tpu.memory_space<vmem>>, vector<1x1x1x4x32xbf16>
    %67 = vector.shape_cast %66 : vector<1x1x1x4x32xbf16> to vector<4x32xbf16>
    %c96_84 = arith.constant 96 : index
    %c0_85 = arith.constant 0 : index
    %68 = vector.load %arg3[%c96_84, %c0_85] : memref<256x128xbf16, #tpu.memory_space<vmem>>, vector<32x128xbf16>
    %cst_86 = arith.constant dense<0.000000e+00> : vector<4x128xf32>
    %69 = tpu.matmul %67, %68, %cst_86 {dimension_numbers = #tpu.dot_dimension_numbers<[1], [0], [0], [1], [0, 0, 1, 1], [], []>} : vector<4x32xbf16>, vector<32x128xbf16>, vector<4x128xf32> -> vector<4x128xf32>
    %70 = arith.addf %65, %69 : vector<4x128xf32>
    %c0_87 = arith.constant 0 : index
    %c1_88 = arith.constant 1 : index
    %c4_89 = arith.constant 4 : index
    %c0_90 = arith.constant 0 : index
    %c0_91 = arith.constant 0 : index
    %71 = vector.load %arg2[%c0_87, %c1_88, %c4_89, %c0_90, %c0_91] : memref<1x4x8x4x32xbf16, #tpu.memory_space<vmem>>, vector<1x1x1x4x32xbf16>
    %72 = vector.shape_cast %71 : vector<1x1x1x4x32xbf16> to vector<4x32xbf16>
    %c128_92 = arith.constant 128 : index
    %c0_93 = arith.constant 0 : index
    %73 = vector.load %arg3[%c128_92, %c0_93] : memref<256x128xbf16, #tpu.memory_space<vmem>>, vector<32x128xbf16>
    %cst_94 = arith.constant dense<0.000000e+00> : vector<4x128xf32>
    %74 = tpu.matmul %72, %73, %cst_94 {dimension_numbers = #tpu.dot_dimension_numbers<[1], [0], [0], [1], [0, 0, 1, 1], [], []>} : vector<4x32xbf16>, vector<32x128xbf16>, vector<4x128xf32> -> vector<4x128xf32>
    %75 = arith.addf %70, %74 : vector<4x128xf32>
    %c0_95 = arith.constant 0 : index
    %c1_96 = arith.constant 1 : index
    %c5_97 = arith.constant 5 : index
    %c0_98 = arith.constant 0 : index
    %c0_99 = arith.constant 0 : index
    %76 = vector.load %arg2[%c0_95, %c1_96, %c5_97, %c0_98, %c0_99] : memref<1x4x8x4x32xbf16, #tpu.memory_space<vmem>>, vector<1x1x1x4x32xbf16>
    %77 = vector.shape_cast %76 : vector<1x1x1x4x32xbf16> to vector<4x32xbf16>
    %c160_100 = arith.constant 160 : index
    %c0_101 = arith.constant 0 : index
    %78 = vector.load %arg3[%c160_100, %c0_101] : memref<256x128xbf16, #tpu.memory_space<vmem>>, vector<32x128xbf16>
    %cst_102 = arith.constant dense<0.000000e+00> : vector<4x128xf32>
    %79 = tpu.matmul %77, %78, %cst_102 {dimension_numbers = #tpu.dot_dimension_numbers<[1], [0], [0], [1], [0, 0, 1, 1], [], []>} : vector<4x32xbf16>, vector<32x128xbf16>, vector<4x128xf32> -> vector<4x128xf32>
    %80 = arith.addf %75, %79 : vector<4x128xf32>
    %c0_103 = arith.constant 0 : index
    %c1_104 = arith.constant 1 : index
    %c6_105 = arith.constant 6 : index
    %c0_106 = arith.constant 0 : index
    %c0_107 = arith.constant 0 : index
    %81 = vector.load %arg2[%c0_103, %c1_104, %c6_105, %c0_106, %c0_107] : memref<1x4x8x4x32xbf16, #tpu.memory_space<vmem>>, vector<1x1x1x4x32xbf16>
    %82 = vector.shape_cast %81 : vector<1x1x1x4x32xbf16> to vector<4x32xbf16>
    %c192_108 = arith.constant 192 : index
    %c0_109 = arith.constant 0 : index
    %83 = vector.load %arg3[%c192_108, %c0_109] : memref<256x128xbf16, #tpu.memory_space<vmem>>, vector<32x128xbf16>
    %cst_110 = arith.constant dense<0.000000e+00> : vector<4x128xf32>
    %84 = tpu.matmul %82, %83, %cst_110 {dimension_numbers = #tpu.dot_dimension_numbers<[1], [0], [0], [1], [0, 0, 1, 1], [], []>} : vector<4x32xbf16>, vector<32x128xbf16>, vector<4x128xf32> -> vector<4x128xf32>
    %85 = arith.addf %80, %84 : vector<4x128xf32>
    %c0_111 = arith.constant 0 : index
    %c1_112 = arith.constant 1 : index
    %c7_113 = arith.constant 7 : index
    %c0_114 = arith.constant 0 : index
    %c0_115 = arith.constant 0 : index
    %86 = vector.load %arg2[%c0_111, %c1_112, %c7_113, %c0_114, %c0_115] : memref<1x4x8x4x32xbf16, #tpu.memory_space<vmem>>, vector<1x1x1x4x32xbf16>
    %87 = vector.shape_cast %86 : vector<1x1x1x4x32xbf16> to vector<4x32xbf16>
    %c224_116 = arith.constant 224 : index
    %c0_117 = arith.constant 0 : index
    %88 = vector.load %arg3[%c224_116, %c0_117] : memref<256x128xbf16, #tpu.memory_space<vmem>>, vector<32x128xbf16>
    %cst_118 = arith.constant dense<0.000000e+00> : vector<4x128xf32>
    %89 = tpu.matmul %87, %88, %cst_118 {dimension_numbers = #tpu.dot_dimension_numbers<[1], [0], [0], [1], [0, 0, 1, 1], [], []>} : vector<4x32xbf16>, vector<32x128xbf16>, vector<4x128xf32> -> vector<4x128xf32>
    %90 = arith.addf %85, %89 : vector<4x128xf32>
    %91 = vector.broadcast %0 : vector<1x128xf32> to vector<4x128xf32>
    %92 = arith.addf %90, %91 : vector<4x128xf32>
    %93 = arith.negf %92 : vector<4x128xf32>
    %94 = math.exp %93 : vector<4x128xf32>
    %cst_119 = arith.constant 1.000000e+00 : f32
    %95 = vector.broadcast %cst_119 : f32 to vector<4x128xf32>
    %96 = arith.addf %95, %94 : vector<4x128xf32>
    %97 = arith.divf %95, %96 : vector<4x128xf32>
    %98 = arith.mulf %92, %97 : vector<4x128xf32>
    %99 = arith.truncf %98 : vector<4x128xf32> to vector<4x128xbf16>
    %c0_120 = arith.constant 0 : index
    %c1_121 = arith.constant 1 : index
    %c0_122 = arith.constant 0 : index
    %c0_123 = arith.constant 0 : index
    %100 = vector.load %arg5[%c0_120, %c1_121, %c0_122, %c0_123] : memref<1x4x4x128xbf16, #tpu.memory_space<vmem>>, vector<1x1x4x128xbf16>
    %101 = vector.shape_cast %100 : vector<1x1x4x128xbf16> to vector<4x128xbf16>
    %102 = vector.shape_cast %99 : vector<4x128xbf16> to vector<1x1x4x128xbf16>
    tpu.vector_store %arg5[%c0_120, %c1_121, %c0_122, %c0_123], %102 {strides = array<i32>} : memref<1x4x4x128xbf16, #tpu.memory_space<vmem>>, vector<1x1x4x128xbf16>,
    %c0_124 = arith.constant 0 : index
    %c2_125 = arith.constant 2 : index
    %c0_126 = arith.constant 0 : index
    %c0_127 = arith.constant 0 : index
    %c0_128 = arith.constant 0 : index
    %103 = vector.load %arg2[%c0_124, %c2_125, %c0_126, %c0_127, %c0_128] : memref<1x4x8x4x32xbf16, #tpu.memory_space<vmem>>, vector<1x1x1x4x32xbf16>
    %104 = vector.shape_cast %103 : vector<1x1x1x4x32xbf16> to vector<4x32xbf16>
    %c0_129 = arith.constant 0 : index
    %c0_130 = arith.constant 0 : index
    %105 = vector.load %arg3[%c0_129, %c0_130] : memref<256x128xbf16, #tpu.memory_space<vmem>>, vector<32x128xbf16>
    %cst_131 = arith.constant dense<0.000000e+00> : vector<4x128xf32>
    %106 = tpu.matmul %104, %105, %cst_131 {dimension_numbers = #tpu.dot_dimension_numbers<[1], [0], [0], [1], [0, 0, 1, 1], [], []>} : vector<4x32xbf16>, vector<32x128xbf16>, vector<4x128xf32> -> vector<4x128xf32>
    %c0_132 = arith.constant 0 : index
    %c2_133 = arith.constant 2 : index
    %c1_134 = arith.constant 1 : index
    %c0_135 = arith.constant 0 : index
    %c0_136 = arith.constant 0 : index
    %107 = vector.load %arg2[%c0_132, %c2_133, %c1_134, %c0_135, %c0_136] : memref<1x4x8x4x32xbf16, #tpu.memory_space<vmem>>, vector<1x1x1x4x32xbf16>
    %108 = vector.shape_cast %107 : vector<1x1x1x4x32xbf16> to vector<4x32xbf16>
    %c32_137 = arith.constant 32 : index
    %c0_138 = arith.constant 0 : index
    %109 = vector.load %arg3[%c32_137, %c0_138] : memref<256x128xbf16, #tpu.memory_space<vmem>>, vector<32x128xbf16>
    %cst_139 = arith.constant dense<0.000000e+00> : vector<4x128xf32>
    %110 = tpu.matmul %108, %109, %cst_139 {dimension_numbers = #tpu.dot_dimension_numbers<[1], [0], [0], [1], [0, 0, 1, 1], [], []>} : vector<4x32xbf16>, vector<32x128xbf16>, vector<4x128xf32> -> vector<4x128xf32>
    %111 = arith.addf %106, %110 : vector<4x128xf32>
    %c0_140 = arith.constant 0 : index
    %c2_141 = arith.constant 2 : index
    %c2_142 = arith.constant 2 : index
    %c0_143 = arith.constant 0 : index
    %c0_144 = arith.constant 0 : index
    %112 = vector.load %arg2[%c0_140, %c2_141, %c2_142, %c0_143, %c0_144] : memref<1x4x8x4x32xbf16, #tpu.memory_space<vmem>>, vector<1x1x1x4x32xbf16>
    %113 = vector.shape_cast %112 : vector<1x1x1x4x32xbf16> to vector<4x32xbf16>
    %c64_145 = arith.constant 64 : index
    %c0_146 = arith.constant 0 : index
    %114 = vector.load %arg3[%c64_145, %c0_146] : memref<256x128xbf16, #tpu.memory_space<vmem>>, vector<32x128xbf16>
    %cst_147 = arith.constant dense<0.000000e+00> : vector<4x128xf32>
    %115 = tpu.matmul %113, %114, %cst_147 {dimension_numbers = #tpu.dot_dimension_numbers<[1], [0], [0], [1], [0, 0, 1, 1], [], []>} : vector<4x32xbf16>, vector<32x128xbf16>, vector<4x128xf32> -> vector<4x128xf32>
    %116 = arith.addf %111, %115 : vector<4x128xf32>
    %c0_148 = arith.constant 0 : index
    %c2_149 = arith.constant 2 : index
    %c3_150 = arith.constant 3 : index
    %c0_151 = arith.constant 0 : index
    %c0_152 = arith.constant 0 : index
    %117 = vector.load %arg2[%c0_148, %c2_149, %c3_150, %c0_151, %c0_152] : memref<1x4x8x4x32xbf16, #tpu.memory_space<vmem>>, vector<1x1x1x4x32xbf16>
    %118 = vector.shape_cast %117 : vector<1x1x1x4x32xbf16> to vector<4x32xbf16>
    %c96_153 = arith.constant 96 : index
    %c0_154 = arith.constant 0 : index
    %119 = vector.load %arg3[%c96_153, %c0_154] : memref<256x128xbf16, #tpu.memory_space<vmem>>, vector<32x128xbf16>
    %cst_155 = arith.constant dense<0.000000e+00> : vector<4x128xf32>
    %120 = tpu.matmul %118, %119, %cst_155 {dimension_numbers = #tpu.dot_dimension_numbers<[1], [0], [0], [1], [0, 0, 1, 1], [], []>} : vector<4x32xbf16>, vector<32x128xbf16>, vector<4x128xf32> -> vector<4x128xf32>
    %121 = arith.addf %116, %120 : vector<4x128xf32>
    %c0_156 = arith.constant 0 : index
    %c2_157 = arith.constant 2 : index
    %c4_158 = arith.constant 4 : index
    %c0_159 = arith.constant 0 : index
    %c0_160 = arith.constant 0 : index
    %122 = vector.load %arg2[%c0_156, %c2_157, %c4_158, %c0_159, %c0_160] : memref<1x4x8x4x32xbf16, #tpu.memory_space<vmem>>, vector<1x1x1x4x32xbf16>
    %123 = vector.shape_cast %122 : vector<1x1x1x4x32xbf16> to vector<4x32xbf16>
    %c128_161 = arith.constant 128 : index
    %c0_162 = arith.constant 0 : index
    %124 = vector.load %arg3[%c128_161, %c0_162] : memref<256x128xbf16, #tpu.memory_space<vmem>>, vector<32x128xbf16>
    %cst_163 = arith.constant dense<0.000000e+00> : vector<4x128xf32>
    %125 = tpu.matmul %123, %124, %cst_163 {dimension_numbers = #tpu.dot_dimension_numbers<[1], [0], [0], [1], [0, 0, 1, 1], [], []>} : vector<4x32xbf16>, vector<32x128xbf16>, vector<4x128xf32> -> vector<4x128xf32>
    %126 = arith.addf %121, %125 : vector<4x128xf32>
    %c0_164 = arith.constant 0 : index
    %c2_165 = arith.constant 2 : index
    %c5_166 = arith.constant 5 : index
    %c0_167 = arith.constant 0 : index
    %c0_168 = arith.constant 0 : index
    %127 = vector.load %arg2[%c0_164, %c2_165, %c5_166, %c0_167, %c0_168] : memref<1x4x8x4x32xbf16, #tpu.memory_space<vmem>>, vector<1x1x1x4x32xbf16>
    %128 = vector.shape_cast %127 : vector<1x1x1x4x32xbf16> to vector<4x32xbf16>
    %c160_169 = arith.constant 160 : index
    %c0_170 = arith.constant 0 : index
    %129 = vector.load %arg3[%c160_169, %c0_170] : memref<256x128xbf16, #tpu.memory_space<vmem>>, vector<32x128xbf16>
    %cst_171 = arith.constant dense<0.000000e+00> : vector<4x128xf32>
    %130 = tpu.matmul %128, %129, %cst_171 {dimension_numbers = #tpu.dot_dimension_numbers<[1], [0], [0], [1], [0, 0, 1, 1], [], []>} : vector<4x32xbf16>, vector<32x128xbf16>, vector<4x128xf32> -> vector<4x128xf32>
    %131 = arith.addf %126, %130 : vector<4x128xf32>
    %c0_172 = arith.constant 0 : index
    %c2_173 = arith.constant 2 : index
    %c6_174 = arith.constant 6 : index
    %c0_175 = arith.constant 0 : index
    %c0_176 = arith.constant 0 : index
    %132 = vector.load %arg2[%c0_172, %c2_173, %c6_174, %c0_175, %c0_176] : memref<1x4x8x4x32xbf16, #tpu.memory_space<vmem>>, vector<1x1x1x4x32xbf16>
    %133 = vector.shape_cast %132 : vector<1x1x1x4x32xbf16> to vector<4x32xbf16>
    %c192_177 = arith.constant 192 : index
    %c0_178 = arith.constant 0 : index
    %134 = vector.load %arg3[%c192_177, %c0_178] : memref<256x128xbf16, #tpu.memory_space<vmem>>, vector<32x128xbf16>
    %cst_179 = arith.constant dense<0.000000e+00> : vector<4x128xf32>
    %135 = tpu.matmul %133, %134, %cst_179 {dimension_numbers = #tpu.dot_dimension_numbers<[1], [0], [0], [1], [0, 0, 1, 1], [], []>} : vector<4x32xbf16>, vector<32x128xbf16>, vector<4x128xf32> -> vector<4x128xf32>
    %136 = arith.addf %131, %135 : vector<4x128xf32>
    %c0_180 = arith.constant 0 : index
    %c2_181 = arith.constant 2 : index
    %c7_182 = arith.constant 7 : index
    %c0_183 = arith.constant 0 : index
    %c0_184 = arith.constant 0 : index
    %137 = vector.load %arg2[%c0_180, %c2_181, %c7_182, %c0_183, %c0_184] : memref<1x4x8x4x32xbf16, #tpu.memory_space<vmem>>, vector<1x1x1x4x32xbf16>
    %138 = vector.shape_cast %137 : vector<1x1x1x4x32xbf16> to vector<4x32xbf16>
    %c224_185 = arith.constant 224 : index
    %c0_186 = arith.constant 0 : index
    %139 = vector.load %arg3[%c224_185, %c0_186] : memref<256x128xbf16, #tpu.memory_space<vmem>>, vector<32x128xbf16>
    %cst_187 = arith.constant dense<0.000000e+00> : vector<4x128xf32>
    %140 = tpu.matmul %138, %139, %cst_187 {dimension_numbers = #tpu.dot_dimension_numbers<[1], [0], [0], [1], [0, 0, 1, 1], [], []>} : vector<4x32xbf16>, vector<32x128xbf16>, vector<4x128xf32> -> vector<4x128xf32>
    %141 = arith.addf %136, %140 : vector<4x128xf32>
    %142 = vector.broadcast %0 : vector<1x128xf32> to vector<4x128xf32>
    %143 = arith.addf %141, %142 : vector<4x128xf32>
    %144 = arith.negf %143 : vector<4x128xf32>
    %145 = math.exp %144 : vector<4x128xf32>
    %cst_188 = arith.constant 1.000000e+00 : f32
    %146 = vector.broadcast %cst_188 : f32 to vector<4x128xf32>
    %147 = arith.addf %146, %145 : vector<4x128xf32>
    %148 = arith.divf %146, %147 : vector<4x128xf32>
    %149 = arith.mulf %143, %148 : vector<4x128xf32>
    %150 = arith.truncf %149 : vector<4x128xf32> to vector<4x128xbf16>
    %c0_189 = arith.constant 0 : index
    %c2_190 = arith.constant 2 : index
    %c0_191 = arith.constant 0 : index
    %c0_192 = arith.constant 0 : index
    %151 = vector.load %arg5[%c0_189, %c2_190, %c0_191, %c0_192] : memref<1x4x4x128xbf16, #tpu.memory_space<vmem>>, vector<1x1x4x128xbf16>
    %152 = vector.shape_cast %151 : vector<1x1x4x128xbf16> to vector<4x128xbf16>
    %153 = vector.shape_cast %150 : vector<4x128xbf16> to vector<1x1x4x128xbf16>
    tpu.vector_store %arg5[%c0_189, %c2_190, %c0_191, %c0_192], %153 {strides = array<i32>} : memref<1x4x4x128xbf16, #tpu.memory_space<vmem>>, vector<1x1x4x128xbf16>,
    %c0_193 = arith.constant 0 : index
    %c3_194 = arith.constant 3 : index
    %c0_195 = arith.constant 0 : index
    %c0_196 = arith.constant 0 : index
    %c0_197 = arith.constant 0 : index
    %154 = vector.load %arg2[%c0_193, %c3_194, %c0_195, %c0_196, %c0_197] : memref<1x4x8x4x32xbf16, #tpu.memory_space<vmem>>, vector<1x1x1x4x32xbf16>
    %155 = vector.shape_cast %154 : vector<1x1x1x4x32xbf16> to vector<4x32xbf16>
    %c0_198 = arith.constant 0 : index
    %c0_199 = arith.constant 0 : index
    %156 = vector.load %arg3[%c0_198, %c0_199] : memref<256x128xbf16, #tpu.memory_space<vmem>>, vector<32x128xbf16>
    %cst_200 = arith.constant dense<0.000000e+00> : vector<4x128xf32>
    %157 = tpu.matmul %155, %156, %cst_200 {dimension_numbers = #tpu.dot_dimension_numbers<[1], [0], [0], [1], [0, 0, 1, 1], [], []>} : vector<4x32xbf16>, vector<32x128xbf16>, vector<4x128xf32> -> vector<4x128xf32>
    %c0_201 = arith.constant 0 : index
    %c3_202 = arith.constant 3 : index
    %c1_203 = arith.constant 1 : index
    %c0_204 = arith.constant 0 : index
    %c0_205 = arith.constant 0 : index
    %158 = vector.load %arg2[%c0_201, %c3_202, %c1_203, %c0_204, %c0_205] : memref<1x4x8x4x32xbf16, #tpu.memory_space<vmem>>, vector<1x1x1x4x32xbf16>
    %159 = vector.shape_cast %158 : vector<1x1x1x4x32xbf16> to vector<4x32xbf16>
    %c32_206 = arith.constant 32 : index
    %c0_207 = arith.constant 0 : index
    %160 = vector.load %arg3[%c32_206, %c0_207] : memref<256x128xbf16, #tpu.memory_space<vmem>>, vector<32x128xbf16>
    %cst_208 = arith.constant dense<0.000000e+00> : vector<4x128xf32>
    %161 = tpu.matmul %159, %160, %cst_208 {dimension_numbers = #tpu.dot_dimension_numbers<[1], [0], [0], [1], [0, 0, 1, 1], [], []>} : vector<4x32xbf16>, vector<32x128xbf16>, vector<4x128xf32> -> vector<4x128xf32>
    %162 = arith.addf %157, %161 : vector<4x128xf32>
    %c0_209 = arith.constant 0 : index
    %c3_210 = arith.constant 3 : index
    %c2_211 = arith.constant 2 : index
    %c0_212 = arith.constant 0 : index
    %c0_213 = arith.constant 0 : index
    %163 = vector.load %arg2[%c0_209, %c3_210, %c2_211, %c0_212, %c0_213] : memref<1x4x8x4x32xbf16, #tpu.memory_space<vmem>>, vector<1x1x1x4x32xbf16>
    %164 = vector.shape_cast %163 : vector<1x1x1x4x32xbf16> to vector<4x32xbf16>
    %c64_214 = arith.constant 64 : index
    %c0_215 = arith.constant 0 : index
    %165 = vector.load %arg3[%c64_214, %c0_215] : memref<256x128xbf16, #tpu.memory_space<vmem>>, vector<32x128xbf16>
    %cst_216 = arith.constant dense<0.000000e+00> : vector<4x128xf32>
    %166 = tpu.matmul %164, %165, %cst_216 {dimension_numbers = #tpu.dot_dimension_numbers<[1], [0], [0], [1], [0, 0, 1, 1], [], []>} : vector<4x32xbf16>, vector<32x128xbf16>, vector<4x128xf32> -> vector<4x128xf32>
    %167 = arith.addf %162, %166 : vector<4x128xf32>
    %c0_217 = arith.constant 0 : index
    %c3_218 = arith.constant 3 : index
    %c3_219 = arith.constant 3 : index
    %c0_220 = arith.constant 0 : index
    %c0_221 = arith.constant 0 : index
    %168 = vector.load %arg2[%c0_217, %c3_218, %c3_219, %c0_220, %c0_221] : memref<1x4x8x4x32xbf16, #tpu.memory_space<vmem>>, vector<1x1x1x4x32xbf16>
    %169 = vector.shape_cast %168 : vector<1x1x1x4x32xbf16> to vector<4x32xbf16>
    %c96_222 = arith.constant 96 : index
    %c0_223 = arith.constant 0 : index
    %170 = vector.load %arg3[%c96_222, %c0_223] : memref<256x128xbf16, #tpu.memory_space<vmem>>, vector<32x128xbf16>
    %cst_224 = arith.constant dense<0.000000e+00> : vector<4x128xf32>
    %171 = tpu.matmul %169, %170, %cst_224 {dimension_numbers = #tpu.dot_dimension_numbers<[1], [0], [0], [1], [0, 0, 1, 1], [], []>} : vector<4x32xbf16>, vector<32x128xbf16>, vector<4x128xf32> -> vector<4x128xf32>
    %172 = arith.addf %167, %171 : vector<4x128xf32>
    %c0_225 = arith.constant 0 : index
    %c3_226 = arith.constant 3 : index
    %c4_227 = arith.constant 4 : index
    %c0_228 = arith.constant 0 : index
    %c0_229 = arith.constant 0 : index
    %173 = vector.load %arg2[%c0_225, %c3_226, %c4_227, %c0_228, %c0_229] : memref<1x4x8x4x32xbf16, #tpu.memory_space<vmem>>, vector<1x1x1x4x32xbf16>
    %174 = vector.shape_cast %173 : vector<1x1x1x4x32xbf16> to vector<4x32xbf16>
    %c128_230 = arith.constant 128 : index
    %c0_231 = arith.constant 0 : index
    %175 = vector.load %arg3[%c128_230, %c0_231] : memref<256x128xbf16, #tpu.memory_space<vmem>>, vector<32x128xbf16>
    %cst_232 = arith.constant dense<0.000000e+00> : vector<4x128xf32>
    %176 = tpu.matmul %174, %175, %cst_232 {dimension_numbers = #tpu.dot_dimension_numbers<[1], [0], [0], [1], [0, 0, 1, 1], [], []>} : vector<4x32xbf16>, vector<32x128xbf16>, vector<4x128xf32> -> vector<4x128xf32>
    %177 = arith.addf %172, %176 : vector<4x128xf32>
    %c0_233 = arith.constant 0 : index
    %c3_234 = arith.constant 3 : index
    %c5_235 = arith.constant 5 : index
    %c0_236 = arith.constant 0 : index
    %c0_237 = arith.constant 0 : index
    %178 = vector.load %arg2[%c0_233, %c3_234, %c5_235, %c0_236, %c0_237] : memref<1x4x8x4x32xbf16, #tpu.memory_space<vmem>>, vector<1x1x1x4x32xbf16>
    %179 = vector.shape_cast %178 : vector<1x1x1x4x32xbf16> to vector<4x32xbf16>
    %c160_238 = arith.constant 160 : index
    %c0_239 = arith.constant 0 : index
    %180 = vector.load %arg3[%c160_238, %c0_239] : memref<256x128xbf16, #tpu.memory_space<vmem>>, vector<32x128xbf16>
    %cst_240 = arith.constant dense<0.000000e+00> : vector<4x128xf32>
    %181 = tpu.matmul %179, %180, %cst_240 {dimension_numbers = #tpu.dot_dimension_numbers<[1], [0], [0], [1], [0, 0, 1, 1], [], []>} : vector<4x32xbf16>, vector<32x128xbf16>, vector<4x128xf32> -> vector<4x128xf32>
    %182 = arith.addf %177, %181 : vector<4x128xf32>
    %c0_241 = arith.constant 0 : index
    %c3_242 = arith.constant 3 : index
    %c6_243 = arith.constant 6 : index
    %c0_244 = arith.constant 0 : index
    %c0_245 = arith.constant 0 : index
    %183 = vector.load %arg2[%c0_241, %c3_242, %c6_243, %c0_244, %c0_245] : memref<1x4x8x4x32xbf16, #tpu.memory_space<vmem>>, vector<1x1x1x4x32xbf16>
    %184 = vector.shape_cast %183 : vector<1x1x1x4x32xbf16> to vector<4x32xbf16>
    %c192_246 = arith.constant 192 : index
    %c0_247 = arith.constant 0 : index
    %185 = vector.load %arg3[%c192_246, %c0_247] : memref<256x128xbf16, #tpu.memory_space<vmem>>, vector<32x128xbf16>
    %cst_248 = arith.constant dense<0.000000e+00> : vector<4x128xf32>
    %186 = tpu.matmul %184, %185, %cst_248 {dimension_numbers = #tpu.dot_dimension_numbers<[1], [0], [0], [1], [0, 0, 1, 1], [], []>} : vector<4x32xbf16>, vector<32x128xbf16>, vector<4x128xf32> -> vector<4x128xf32>
    %187 = arith.addf %182, %186 : vector<4x128xf32>
    %c0_249 = arith.constant 0 : index
    %c3_250 = arith.constant 3 : index
    %c7_251 = arith.constant 7 : index
    %c0_252 = arith.constant 0 : index
    %c0_253 = arith.constant 0 : index
    %188 = vector.load %arg2[%c0_249, %c3_250, %c7_251, %c0_252, %c0_253] : memref<1x4x8x4x32xbf16, #tpu.memory_space<vmem>>, vector<1x1x1x4x32xbf16>
    %189 = vector.shape_cast %188 : vector<1x1x1x4x32xbf16> to vector<4x32xbf16>
    %c224_254 = arith.constant 224 : index
    %c0_255 = arith.constant 0 : index
    %190 = vector.load %arg3[%c224_254, %c0_255] : memref<256x128xbf16, #tpu.memory_space<vmem>>, vector<32x128xbf16>
    %cst_256 = arith.constant dense<0.000000e+00> : vector<4x128xf32>
    %191 = tpu.matmul %189, %190, %cst_256 {dimension_numbers = #tpu.dot_dimension_numbers<[1], [0], [0], [1], [0, 0, 1, 1], [], []>} : vector<4x32xbf16>, vector<32x128xbf16>, vector<4x128xf32> -> vector<4x128xf32>
    %192 = arith.addf %187, %191 : vector<4x128xf32>
    %193 = vector.broadcast %0 : vector<1x128xf32> to vector<4x128xf32>
    %194 = arith.addf %192, %193 : vector<4x128xf32>
    %195 = arith.negf %194 : vector<4x128xf32>
    %196 = math.exp %195 : vector<4x128xf32>
    %cst_257 = arith.constant 1.000000e+00 : f32
    %197 = vector.broadcast %cst_257 : f32 to vector<4x128xf32>
    %198 = arith.addf %197, %196 : vector<4x128xf32>
    %199 = arith.divf %197, %198 : vector<4x128xf32>
    %200 = arith.mulf %194, %199 : vector<4x128xf32>
    %201 = arith.truncf %200 : vector<4x128xf32> to vector<4x128xbf16>
    %c0_258 = arith.constant 0 : index
    %c3_259 = arith.constant 3 : index
    %c0_260 = arith.constant 0 : index
    %c0_261 = arith.constant 0 : index
    %202 = vector.load %arg5[%c0_258, %c3_259, %c0_260, %c0_261] : memref<1x4x4x128xbf16, #tpu.memory_space<vmem>>, vector<1x1x4x128xbf16>
    %203 = vector.shape_cast %202 : vector<1x1x4x128xbf16> to vector<4x128xbf16>
    %204 = vector.shape_cast %201 : vector<4x128xbf16> to vector<1x1x4x128xbf16>
    tpu.vector_store %arg5[%c0_258, %c3_259, %c0_260, %c0_261], %204 {strides = array<i32>} : memref<1x4x4x128xbf16, #tpu.memory_space<vmem>>, vector<1x1x4x128xbf16>,
    return
  }
  func.func @transform_0(%arg0: i32, %arg1: i32) -> (i32, i32, i32, i32, i32) {
    %c0_i32 = arith.constant 0 : i32
    %c0_i32_0 = arith.constant 0 : i32
    %c0_i32_1 = arith.constant 0 : i32
    %c0_i32_2 = arith.constant 0 : i32
    return %arg0, %arg1, %c0_i32, %c0_i32_0, %c0_i32_1 : i32, i32, i32, i32, i32
  }
  func.func @transform_1(%arg0: i32, %arg1: i32) -> (i32, i32) {
    %c0_i32 = arith.constant 0 : i32
    %c0_i32_0 = arith.constant 0 : i32
    %c0_i32_1 = arith.constant 0 : i32
    return %c0_i32, %c0_i32_0 : i32, i32
  }
  func.func @transform_2(%arg0: i32, %arg1: i32) -> (i32, i32) {
    %c0_i32 = arith.constant 0 : i32
    %c0_i32_0 = arith.constant 0 : i32
    %c0_i32_1 = arith.constant 0 : i32
    return %c0_i32, %c0_i32_0 : i32, i32
  }
  func.func @transform_3(%arg0: i32, %arg1: i32) -> (i32, i32, i32, i32) {
    %c0_i32 = arith.constant 0 : i32
    %c0_i32_0 = arith.constant 0 : i32
    %c0_i32_1 = arith.constant 0 : i32
    return %arg0, %arg1, %c0_i32, %c0_i32_0 : i32, i32, i32, i32
  }
}

</mosaic_0001>

<bundles_post_ra>
// kernel: tpu_custom_call.1
= control target key start
LH: loop header
LB: loop body
LE: loop exit
PB: predicated region body
PF: predicated region fallthrough
CT: control target
= control target key end

     0   :  { %8 = vsyncpa [#allocation3], 0  ;;  %s3595_s0 = inlined_call_operand.hbm [shape: bf16[2,4,8,4,32], index: 0, kind: input, shape index: {}]   ;;  %s3596_s1 = inlined_call_operand.hbm [shape: bf16[256,128], index: 1, kind: input, shape index: {}]   ;;  %s3597_s2 = inlined_call_operand.vmem [shape: f32[1,128], index: 2, kind: input, shape index: {}]   ;;  %s3598_s3 = inlined_call_operand.hbm [shape: bf16[2,4,4,128], index: 3, kind: output, shape index: {}]  }
   0x1   :  { %10 = vsyncpa [#allocation3 + $0x1], 0 }
   0x2   :  { %11 = vsyncpa [#allocation6], 0 }
   0x3   :  { %12 = vsyncpa [#allocation4], 0 }
   0x4   :  { %14 = vsyncpa [#allocation4 + $0x1], 0  ;;  %s3203_s12 = smov 0   ;;  %s3205_s13 = smov 0  }
   0x5   :  { %s3207_s14 = smov 0   ;;  %s3209_s15 = smov 0  }
   0x6   :  { %s3211_s16 = smov 0   ;;  %s3213_s17 = smov 0  }
   0x7 LB: > { %s2365_s18 = sadd.s32 4294967295, %s3170_s17   ;;  %s2366_s19 = sadd.s32 4294967294, %s3170_s17   ;;  %s3170_s17 = sphi %s3213_s17, %s20_s17   ;;  %s3166_s16 = sphi %s3211_s16, %s3616_s16   ;;  %s3162_s15 = sphi %s3209_s15, %s3615_s15   ;;  %s3158_s14 = sphi %s3207_s14, %s3614_s14   ;;  %s3154_s13 = sphi %s3205_s13, %s3613_s13   ;;  %s3150_s12 = sphi %s3203_s12, %s3612_s12  }
   0x8   : > { %p54_p0 = scmp.ne.s32.totalorder %s3154_s13, %s3150_s12  ;;  %p3237_p1 = scmp.eq.s32.totalorder %s2365_s18, 0 }
   0x9   : > { %p3241_p2 = scmp.eq.s32.totalorder %s2365_s18, 1  ;;  %p128_p3 = scmp.eq.s32.totalorder %s2366_s19, 1 }
   0xa   : > { %p3247_p4 = por %p3237_p1, %p54_p0  ;;  %p2367_p5 = scmp.ge.s32.totalorder %s3170_s17, 1 }
   0xb   : > { %p3252_p6 = por %p128_p3, %p54_p0  ;;  %p135_p7 = scmp.lt.s32.totalorder %s3170_s17, 3 }
   0xc   : > { %s3602_s22 = scalar_select %p3247_p4, 1, 0 }
   0xd   : > { %s3603_s23 = scalar_select %p3252_p6, 1, 0 }
   0xe   : > { %p3257_p8 = pnand %p2367_p5, %p135_p7  ;;  %s3172_s25 = smov [#allocation5]  }
   0xf   : > { %s147_s26 = sshll.u32 %s3172_s25, 4  ;;  %s32_s28 = sadd.s32 1, %s3166_s16  ;;  %s148_s26 = int_to_ptr.vmem [resolvable:$true] %s147_s26 }
  0x10   : > { %p2879_p9 = pneg %p3257_p8  ;;  %s3043_s29 = scalar_lea.vmem %s148_s26, 2048 }
  0x11   : > { %p3044_p13 = scmp.ne.s32.totalorder %s148_s26, %s3043_s29  ;;  %p3051_p5 = scmp.lt.s32.totalorder %s148_s26, %s148_s26 }
  0x12   : > { %p3266_p11 = pnand %p2879_p9, %p3237_p1  ;;  %p3052_p7 = scmp.lt.s32.totalorder %s3043_s29, %s3043_s29 }
  0x14   : > { %p3034_p12 = pneg %p3266_p11  ;;  %p3053_p6 = por %p3052_p7, %p3051_p5 }
  0x16   : > { %p3046_p0 = pnand %p3044_p13, %p3034_p12 }
  0x18   : > { %p3047_p3 = pneg %p3046_p0 }
  0x1a   : > { %p3054_p4 = pnand %p3053_p6, %p3047_p3 }
  0x1c   : > { %3057 = shalt.err (!%p3054_p4)
}
  0x1d   : > { %s3173_s30 = smov 64   ;;  %s3174_s4 = smov 4  }
  0x1e   : > { %2882 = dma.hbm_to_vmem [thread:$0]  (!%p3266_p11), %s3596_s1, 2048, %s148_s26, [#allocation6], %s3173_s30, %s3173_s30, %s3174_s4  }
  0x1f   : > { %p34_p6 = scmp.ge.s32.totalorder %s32_s28, 2  ;;  %s41_s7 = sadd.s32 1, %s3158_s14 }
  0x20   : > { %p48_p4 = scmp.ne.s32.totalorder %s3158_s14, %s3154_s13  ;;  %p49_p9 = scmp.eq.s32.totalorder %s3170_s17, 0 }
  0x21   : > { %s3618_s28 = smov (%p34_p6, %s32_s28), 0  ;;  %p2892_p0 = scmp.lt.s32.totalorder %s3170_s17, 2 }
  0x22   : > { %p3284_p12 = por %p49_p9, %p48_p4  ;;  %p3290_p13 = por %p3241_p2, %p48_p4 }
  0x23   : > { %s36_s10 = ssub.s32 %s3166_s16, %s3618_s28  ;;  %s164_s11 = sand.u32 1, %s3158_s14  }
  0x24   : > { %p39_p11 = scmp.eq.s32.totalorder %s36_s10, 0  ;;  %s2370_s18 = sshll.u32 %s164_s11, 6 }
  0x25   : > { %s2517_s25 = sshll.u32 %s3166_s16, 10  ;;  %s168_s30 = scalar_lea.vmem [#allocation2], %s2370_s18 }
  0x26   : > { %s3299_s19 = scalar_select %p39_p11, %s3158_s14, %s41_s7  }
  0x27   : > { %s177_s29 = scalar_lea.hbm %s3595_s0, %s2517_s25  ;;  %s178_s4 = sshll.u32 %s168_s30, 4  ;;  %s179_s4 = int_to_ptr.vmem [resolvable:$true] %s178_s4 }
  0x28   : > { %p3307_p2 = pnand %p2892_p0, %p3284_p12  ;;  %s165_s5 = scalar_lea.sflag [#allocation3], %s164_s11 }
  0x29   : > { %s3071_s6 = scalar_lea.vmem %s179_s4, 1024  ;;  %s3175_s7 = smov [#allocation2]  }
  0x2a   : > { %p3060_p3 = pneg %p3307_p2  ;;  %p3072_p5 = scmp.ne.s32.totalorder %s179_s4, %s3071_s6 }
  0x2b   : > { %s3076_s10 = sshll.u32 %s3175_s7, 4  ;;  %s3077_s10 = int_to_ptr.vmem [resolvable:$false] %s3076_s10 }
  0x2c   : > { %p3074_p7 = pnand %p3072_p5, %p3060_p3  ;;  %s3078_s25 = scalar_lea.vmem %s3077_s10, 2048 }
  0x2d   : > { %p3079_p4 = scmp.lt.s32.totalorder %s179_s4, %s3077_s10  ;;  %p3080_p9 = scmp.lt.s32.totalorder %s3078_s25, %s3071_s6 }
  0x2e   : > { %p3075_p6 = pneg %p3074_p7 }
  0x2f   : > { %p3081_p11 = por %p3080_p9, %p3079_p4 }
  0x31   : > { %p3082_p10 = pnand %p3081_p11, %p3075_p6 }
  0x33   : > { %3085 = shalt.err (!%p3082_p10)
}
  0x34   : > { %s3176_s8 = smov 32   ;;  %s3177_s18 = smov 2  }
  0x35   : > { %2886 = dma.hbm_to_vmem [thread:$0]  (!%p3307_p2), %s177_s29, 1024, %s179_s4, %s165_s5, %s3176_s8, %s3176_s8, %s3177_s18  }
  0x36   : > { %190 = sbr.rel (%p3257_p8) target bundleno = 441 (0x1b9), region = 32  ;;  %s3318_s11 = sand.u32 (!%p3257_p8), 1, %s3154_s13  }
  0x37   : > { %s2374_s26 = sshll.u32 (!%p3257_p8), %s3318_s11, 6  ;;  %s193_s27 = scalar_lea.sflag (!%p3257_p8), [#allocation3], %s3318_s11 }
  0x38   : > { %s3322_s30 = scalar_lea.vmem (!%p3257_p8), [#allocation2], %s2374_s26  ;;  %p3609_p12 = scmp.ne.s32.totalorder (!%p3257_p8), %s3602_s22, 0 }
  0x3b   : > { %3137 = dma.done.wait (%p3609_p12), %s193_s27, 1024  }
  0x3c   : > { %3139 = vsyncadd (%p3609_p12), %s193_s27, 4294966272 }
  0x3d   : > { %3141 = dma.done.wait (%p3237_p1), [#allocation6], 2048  }
  0x3e   : > { %3143 = vsyncadd (%p3237_p1), [#allocation6], 4294965248  ;;  %v3178_v0 = vmov 0.0   ;;  %vm3179_vm0 = vmmov 0   ;;  %v2952_v1 = vld [vmem:[#allocation5 + $0x18] sm:$0xff]   ;;  %v2953_v2 = vld [vmem:[#allocation5 + $0x8] sm:$0xff]  }
  0x3f   : > { %2615 = vmatprep.subr.bf16.mxu0 %v3178_v0  ;;  %2623 = vmatprep.subr.bf16.mxu1 %v3178_v0  ;;  %v2954_v3 = vld [vmem:[#allocation5 + $0x10] sm:$0xff]   ;;  %v2955_v4 = vld [vmem:[#allocation5] sm:$0xff]   ;;  %vm250_vm1 = vcmask 261120   ;;  %v2956_v7 = vld [vmem:[#allocation5 + $0x28] sm:$0xff]   ;;  %s2376_s24 = sshll.u32 %s3318_s11, 3  ;;  %s2518_s21 = sshll.u32 %s3162_s15, 7 }
  0x40   : > { %2619 = vmatprep.mubr.msk.bf16.mxu0 %vm3179_vm0, %v3178_v0  ;;  %2627 = vmatprep.mubr.msk.bf16.mxu1 %vm3179_vm0, %v3178_v0  ;;  %v2377_v5 = vld [vmem:[%s3322_s30 + $0x2] sm:$0x3]  ;;  %v227_v6 = vld [vmem:[%s3322_s30] sm:$0x3]  ;;  %v2957_v8 = vld [vmem:[#allocation5 + $0x38] sm:$0xff]   ;;  %s3532_s29 = scalar_lea.vmem [#allocation7], %s2376_s24  ;;  %s3546_s7 = scalar_lea.hbm %s3598_s3, %s2518_s21 }
  0x41   : > { %2616 = vmatpush3.bf16.msra.mxu0 %v2952_v1  ;;  %2624 = vmatpush3.bf16.msra.mxu1 %v2953_v2  ;;  %v2958_v9 = vld [vmem:[#allocation5 + $0x20] sm:$0xff]   ;;  %v2959_v10 = vld [vmem:[#allocation5 + $0x30] sm:$0xff]   ;;  %v2960_v13 = vld [vmem:[#allocation5 + $0x48] sm:$0xff]   ;;  %s2268_s4 = sshll.u32 %s3532_s29, 4  ;;  %s2253_s10 = scalar_lea.sflag [#allocation4], %s3318_s11  ;;  %s3541_s4 = int_to_ptr.vmem [resolvable:$true] %s2268_s4 }
  0x42   : > { %2617 = vmatprep.subr.bf16.mxu0 %v3178_v0  ;;  %2625 = vmatprep.subr.bf16.mxu1 %v3178_v0  ;;  %v2384_v11 = vld [vmem:[%s3322_s30 + $0x4] sm:$0x3]  ;;  %v2388_v12 = vld [vmem:[%s3322_s30 + $0x6] sm:$0x3]  ;;  %v2961_v14 = vld [vmem:[#allocation5 + $0x58] sm:$0xff]   ;;  %s3086_s25 = scalar_lea.vmem %s3541_s4, 128 }
  0x43   : > { %v2962_v15 = vld [vmem:[#allocation5 + $0x40] sm:$0xff]   ;;  %v2963_v16 = vld [vmem:[#allocation5 + $0x50] sm:$0xff]   ;;  %v2392_v17 = vld [vmem:[%s3322_s30 + $0x8] sm:$0x3]  ;;  %p3087_p1 = scmp.ne.s32.totalorder %s3541_s4, %s3086_s25  ;;  %s3180_s15 = smov [#allocation7]  }
  0x44   : > { %v2396_v18 = vld [vmem:[%s3322_s30 + $0xa] sm:$0x3]  ;;  %v2965_v20 = vld [vmem:[#allocation5 + $0x78] sm:$0xff]   ;;  %v2966_v21 = vld [vmem:[#allocation5 + $0x60] sm:$0xff]   ;;  %s3090_s8 = sshll.u32 %s3180_s15, 4  ;;  %s3091_s8 = int_to_ptr.vmem [resolvable:$false] %s3090_s8 }
  0x45   : > { %2618 = vmatpush3.bf16.msra.mxu0 %v2954_v3  ;;  %2626 = vmatpush3.bf16.msra.mxu1 %v2955_v4  ;;  %v2964_v19 = vld [vmem:[#allocation5 + $0x68] sm:$0xff]   ;;  %v2967_v22 = vld [vmem:[#allocation5 + $0x70] sm:$0xff]   ;;  %v2968_v25 = vld [vmem:[#allocation5 + $0x18] sm:$0xff]   ;;  %p3088_p8 = pnand %p3087_p1, %p3290_p13  ;;  %s3092_s18 = scalar_lea.vmem %s3091_s8, 256 }
  0x46   : > { %2631 = vmatprep.subr.bf16.mxu0 %v3178_v0  ;;  %2639 = vmatprep.subr.bf16.mxu1 %v3178_v0  ;;  %v2400_v23 = vld [vmem:[%s3322_s30 + $0xc] sm:$0x3]  ;;  %v2404_v24 = vld [vmem:[%s3322_s30 + $0xe] sm:$0x3]  ;;  %v2970_v27 = vld [vmem:[#allocation5 + $0x10] sm:$0xff]   ;;  %p3093_p0 = scmp.lt.s32.totalorder %s3541_s4, %s3091_s8  ;;  %p3094_p2 = scmp.lt.s32.totalorder %s3092_s18, %s3086_s25 }
  0x47   : > { %v2969_v26 = vld [vmem:[#allocation5 + $0x8] sm:$0xff]   ;;  %v2971_v28 = vld [vmem:[#allocation5] sm:$0xff]   ;;  %v2411_v29 = vld [vmem:[%s3322_s30 + $0x12] sm:$0x3]  ;;  %p3089_p10 = pneg %p3088_p8 }
  0x48   : > { %2620 = vmatmul.mubr.msk.bf16.vlgmr.msra.gmra.mxu0 %vm250_vm1, %v2377_v5  ;;  %2628 = vmatmul.mubr.msk.bf16.vlgmr.msra.gmra.mxu1 %vm250_vm1, %v227_v6  ;;  %v2410_v30 = vld [vmem:[%s3322_s30 + $0x10] sm:$0x3]  ;;  %v2972_v31 = vld [vmem:[#allocation5 + $0x28] sm:$0xff]   ;;  %v2973_v32 = vld [vmem:[#allocation5 + $0x38] sm:$0xff]   ;;  %p3095_p3 = por %p3094_p2, %p3093_p0 }
  0x49   : > { %2632 = vmatpush3.bf16.msra.mxu0 %v2956_v7  ;;  %2640 = vmatpush3.bf16.msra.mxu1 %v2957_v8  ;;  %v2974_v33 = vld [vmem:[#allocation5 + $0x20] sm:$0xff]   ;;  %v2975_v34 = vld [vmem:[#allocation5 + $0x30] sm:$0xff]   ;;  %v2976_v37 = vld [vmem:[#allocation5 + $0x48] sm:$0xff]  }
  0x4a   : > { %2633 = vmatprep.subr.bf16.mxu0 %v3178_v0  ;;  %2641 = vmatprep.subr.bf16.mxu1 %v3178_v0  ;;  %v2418_v35 = vld [vmem:[%s3322_s30 + $0x14] sm:$0x3]  ;;  %v2422_v36 = vld [vmem:[%s3322_s30 + $0x16] sm:$0x3]  ;;  %v2977_v38 = vld [vmem:[#allocation5 + $0x58] sm:$0xff]   ;;  %p3096_p5 = pnand %p3095_p3, %p3089_p10 }
  0x4b   : > { %2635 = vmatprep.mubr.msk.bf16.mxu0 %vm3179_vm0, %v3178_v0  ;;  %2643 = vmatprep.mubr.msk.bf16.mxu1 %vm3179_vm0, %v3178_v0  ;;  %v2978_v39 = vld [vmem:[#allocation5 + $0x40] sm:$0xff]   ;;  %v2979_v40 = vld [vmem:[#allocation5 + $0x50] sm:$0xff]   ;;  %v2426_v41 = vld [vmem:[%s3322_s30 + $0x18] sm:$0x3] }
  0x4c   : > { %v2980_v42 = vld [vmem:[#allocation5 + $0x68] sm:$0xff]   ;;  %v2430_v43 = vld [vmem:[%s3322_s30 + $0x1a] sm:$0x3]  ;;  %v2982_v45 = vld [vmem:[#allocation5 + $0x60] sm:$0xff]  }
  0x4d   : > { %2634 = vmatpush3.bf16.msra.mxu0 %v2958_v9  ;;  %2642 = vmatpush3.bf16.msra.mxu1 %v2959_v10  ;;  %v2981_v44 = vld [vmem:[#allocation5 + $0x78] sm:$0xff]   ;;  %v2983_v46 = vld [vmem:[#allocation5 + $0x70] sm:$0xff]   ;;  %v2985_v50 = vld [vmem:[#allocation5 + $0x8] sm:$0xff]  }
  0x4e   : > { %2647 = vmatprep.subr.bf16.mxu0 %v3178_v0  ;;  %2655 = vmatprep.subr.bf16.mxu1 %v3178_v0  ;;  %v2434_v47 = vld [vmem:[%s3322_s30 + $0x1c] sm:$0x3]  ;;  %v2438_v48 = vld [vmem:[%s3322_s30 + $0x1e] sm:$0x3]  ;;  %v2986_v51 = vld [vmem:[#allocation5 + $0x10] sm:$0xff]  }
  0x4f   : > { %v2984_v49 = vld [vmem:[#allocation5 + $0x18] sm:$0xff]   ;;  %v2987_v52 = vld [vmem:[#allocation5] sm:$0xff]   ;;  %v2988_v55 = vld [vmem:[#allocation5 + $0x28] sm:$0xff]  }
  0x50   : > { %2636 = vmatmul.mubr.msk.bf16.vlgmr.msra.gmra.mxu0 %vm250_vm1, %v2384_v11  ;;  %2644 = vmatmul.mubr.msk.bf16.vlgmr.msra.gmra.mxu1 %vm250_vm1, %v2388_v12  ;;  %v2445_v53 = vld [vmem:[%s3322_s30 + $0x22] sm:$0x3]  ;;  %v2444_v54 = vld [vmem:[%s3322_s30 + $0x20] sm:$0x3]  ;;  %v2989_v56 = vld [vmem:[#allocation5 + $0x38] sm:$0xff]  }
  0x51   : > { %2648 = vmatpush3.bf16.msra.mxu0 %v2960_v13  ;;  %2656 = vmatpush3.bf16.msra.mxu1 %v2961_v14  ;;  %v2990_v57 = vld [vmem:[#allocation5 + $0x20] sm:$0xff]   ;;  %v2991_v58 = vld [vmem:[#allocation5 + $0x30] sm:$0xff]   ;;  %v2992_v60 = vld [vmem:[#allocation5 + $0x48] sm:$0xff]  }
  0x52   : > { %2649 = vmatprep.subr.bf16.mxu0 %v3178_v0  ;;  %2657 = vmatprep.subr.bf16.mxu1 %v3178_v0  ;;  %v2452_v59 = vld [vmem:[%s3322_s30 + $0x24] sm:$0x3]  ;;  %v2456_v61 = vld [vmem:[%s3322_s30 + $0x26] sm:$0x3]  ;;  %v2993_v62 = vld [vmem:[#allocation5 + $0x58] sm:$0xff]  }
  0x53   : > { %2651 = vmatprep.mubr.msk.bf16.mxu0 %vm3179_vm0, %v3178_v0  ;;  %2659 = vmatprep.mubr.msk.bf16.mxu1 %vm3179_vm0, %v3178_v0  ;;  %v2994_v63 = vld [vmem:[#allocation5 + $0x40] sm:$0xff]   ;;  %v2995_v1 = vld [vmem:[#allocation5 + $0x50] sm:$0xff]   ;;  %v2460_v2 = vld [vmem:[%s3322_s30 + $0x28] sm:$0x3] }
  0x54   : > { %v2996_v3 = vld [vmem:[#allocation5 + $0x68] sm:$0xff]   ;;  %v2997_v5 = vld [vmem:[#allocation5 + $0x78] sm:$0xff]   ;;  %v2998_v6 = vld [vmem:[#allocation5 + $0x60] sm:$0xff]  }
  0x55   : > { %2650 = vmatpush3.bf16.msra.mxu0 %v2962_v15  ;;  %2658 = vmatpush3.bf16.msra.mxu1 %v2963_v16  ;;  %v2464_v4 = vld [vmem:[%s3322_s30 + $0x2a] sm:$0x3]  ;;  %v2999_v7 = vld [vmem:[#allocation5 + $0x70] sm:$0xff]   ;;  %v2468_v8 = vld [vmem:[%s3322_s30 + $0x2c] sm:$0x3] }
  0x56   : > { %2663 = vmatprep.subr.bf16.mxu0 %v3178_v0  ;;  %2671 = vmatprep.subr.bf16.mxu1 %v3178_v0  ;;  %v3000_v9 = vld [vmem:[#allocation5 + $0x18] sm:$0xff]   ;;  %v2472_v10 = vld [vmem:[%s3322_s30 + $0x2e] sm:$0x3]  ;;  %v3002_v12 = vld [vmem:[#allocation5 + $0x10] sm:$0xff]  }
  0x57   : > { %v3001_v11 = vld [vmem:[#allocation5 + $0x8] sm:$0xff]   ;;  %v3003_v13 = vld [vmem:[#allocation5] sm:$0xff]   ;;  %v2479_v14 = vld [vmem:[%s3322_s30 + $0x32] sm:$0x3] }
  0x58   : > { %2652 = vmatmul.mubr.msk.bf16.vlgmr.msra.gmra.mxu0 %vm250_vm1, %v2392_v17  ;;  %2660 = vmatmul.mubr.msk.bf16.vlgmr.msra.gmra.mxu1 %vm250_vm1, %v2396_v18  ;;  %v3004_v15 = vld [vmem:[#allocation5 + $0x28] sm:$0xff]   ;;  %v2478_v16 = vld [vmem:[%s3322_s30 + $0x30] sm:$0x3]  ;;  %v3005_v17 = vld [vmem:[#allocation5 + $0x38] sm:$0xff]  }
  0x59   : > { %2664 = vmatpush3.bf16.msra.mxu0 %v2964_v19  ;;  %2672 = vmatpush3.bf16.msra.mxu1 %v2965_v20  ;;  %v3006_v18 = vld [vmem:[#allocation5 + $0x20] sm:$0xff]   ;;  %v3007_v19 = vld [vmem:[#allocation5 + $0x30] sm:$0xff]  }
  0x5a   : > { %2665 = vmatprep.subr.bf16.mxu0 %v3178_v0  ;;  %2673 = vmatprep.subr.bf16.mxu1 %v3178_v0  ;;  %v2486_v20 = vld [vmem:[%s3322_s30 + $0x34] sm:$0x3] }
  0x5b   : > { %2667 = vmatprep.mubr.msk.bf16.mxu0 %vm3179_vm0, %v3178_v0  ;;  %2675 = vmatprep.mubr.msk.bf16.mxu1 %vm3179_vm0, %v3178_v0 }
  0x5d   : > { %2666 = vmatpush3.bf16.msra.mxu0 %v2966_v21  ;;  %2674 = vmatpush3.bf16.msra.mxu1 %v2967_v22  ;;  %v3008_v21 = vld [vmem:[#allocation5 + $0x48] sm:$0xff]   ;;  %v2490_v22 = vld [vmem:[%s3322_s30 + $0x36] sm:$0x3] }
  0x5e   : > { %2679 = vmatprep.subr.bf16.mxu0 %v3178_v0  ;;  %2687 = vmatprep.subr.bf16.mxu1 %v3178_v0 }
  0x60   : > { %2668 = vmatmul.mubr.msk.bf16.vlgmr.msra.gmra.mxu0 %vm250_vm1, %v2400_v23  ;;  %2676 = vmatmul.mubr.msk.bf16.vlgmr.msra.gmra.mxu1 %vm250_vm1, %v2404_v24  ;;  %v3009_v23 = vld [vmem:[#allocation5 + $0x58] sm:$0xff]   ;;  %v3010_v24 = vld [vmem:[#allocation5 + $0x40] sm:$0xff]  }
  0x61   : > { %2680 = vmatpush3.bf16.msra.mxu0 %v2968_v25  ;;  %2688 = vmatpush3.bf16.msra.mxu1 %v2969_v26  ;;  %v3011_v25 = vld [vmem:[#allocation5 + $0x50] sm:$0xff]   ;;  %v2494_v26 = vld [vmem:[%s3322_s30 + $0x38] sm:$0x3] }
  0x62   : > { %2681 = vmatprep.subr.bf16.mxu0 %v3178_v0  ;;  %2689 = vmatprep.subr.bf16.mxu1 %v3178_v0 }
  0x63   : > { %2683 = vmatprep.mubr.msk.bf16.mxu0 %vm3179_vm0, %v3178_v0  ;;  %2691 = vmatprep.mubr.msk.bf16.mxu1 %vm3179_vm0, %v3178_v0 }
  0x65   : > { %2682 = vmatpush3.bf16.msra.mxu0 %v2970_v27  ;;  %2690 = vmatpush3.bf16.msra.mxu1 %v2971_v28  ;;  %v3012_v27 = vld [vmem:[#allocation5 + $0x68] sm:$0xff]   ;;  %v2498_v28 = vld [vmem:[%s3322_s30 + $0x3a] sm:$0x3] }
  0x66   : > { %2695 = vmatprep.subr.bf16.mxu0 %v3178_v0  ;;  %2703 = vmatprep.subr.bf16.mxu1 %v3178_v0 }
  0x68   : > { %2684 = vmatmul.mubr.msk.bf16.vlgmr.msra.gmra.mxu0 %vm250_vm1, %v2411_v29  ;;  %2692 = vmatmul.mubr.msk.bf16.vlgmr.msra.gmra.mxu1 %vm250_vm1, %v2410_v30  ;;  %v3013_v29 = vld [vmem:[#allocation5 + $0x78] sm:$0xff]   ;;  %v3014_v30 = vld [vmem:[#allocation5 + $0x60] sm:$0xff]  }
  0x69   : > { %2696 = vmatpush3.bf16.msra.mxu0 %v2972_v31  ;;  %2704 = vmatpush3.bf16.msra.mxu1 %v2973_v32  ;;  %v3015_v31 = vld [vmem:[#allocation5 + $0x70] sm:$0xff]   ;;  %v2502_v32 = vld [vmem:[%s3322_s30 + $0x3c] sm:$0x3] }
  0x6a   : > { %2697 = vmatprep.subr.bf16.mxu0 %v3178_v0  ;;  %2705 = vmatprep.subr.bf16.mxu1 %v3178_v0 }
  0x6b   : > { %2699 = vmatprep.mubr.msk.bf16.mxu0 %vm3179_vm0, %v3178_v0  ;;  %2707 = vmatprep.mubr.msk.bf16.mxu1 %vm3179_vm0, %v3178_v0 }
  0x6d   : > { %2698 = vmatpush3.bf16.msra.mxu0 %v2974_v33  ;;  %2706 = vmatpush3.bf16.msra.mxu1 %v2975_v34  ;;  %v2506_v33 = vld [vmem:[%s3322_s30 + $0x3e] sm:$0x3] }
  0x6e   : > { %2711 = vmatprep.subr.bf16.mxu0 %v3178_v0  ;;  %2719 = vmatprep.subr.bf16.mxu1 %v3178_v0 }
  0x70   : > { %2700 = vmatmul.mubr.msk.bf16.vlgmr.msra.gmra.mxu0 %vm250_vm1, %v2418_v35  ;;  %2708 = vmatmul.mubr.msk.bf16.vlgmr.msra.gmra.mxu1 %vm250_vm1, %v2422_v36 }
  0x71   : > { %2712 = vmatpush3.bf16.msra.mxu0 %v2976_v37  ;;  %2720 = vmatpush3.bf16.msra.mxu1 %v2977_v38 }
  0x72   : > { %2713 = vmatprep.subr.bf16.mxu0 %v3178_v0  ;;  %2721 = vmatprep.subr.bf16.mxu1 %v3178_v0 }
  0x73   : > { %2715 = vmatprep.mubr.msk.bf16.mxu0 %vm3179_vm0, %v3178_v0  ;;  %2723 = vmatprep.mubr.msk.bf16.mxu1 %vm3179_vm0, %v3178_v0 }
  0x75   : > { %2714 = vmatpush3.bf16.msra.mxu0 %v2978_v39  ;;  %2722 = vmatpush3.bf16.msra.mxu1 %v2979_v40 }
  0x76   : > { %2727 = vmatprep.subr.bf16.mxu0 %v3178_v0  ;;  %2735 = vmatprep.subr.bf16.mxu1 %v3178_v0 }
  0x78   : > { %2716 = vmatmul.mubr.msk.bf16.vlgmr.msra.gmra.mxu0 %vm250_vm1, %v2426_v41  ;;  %2724 = vmatmul.mubr.msk.bf16.vlgmr.msra.gmra.mxu1 %vm250_vm1, %v2430_v43 }
  0x79   : > { %2728 = vmatpush3.bf16.msra.mxu0 %v2980_v42  ;;  %2736 = vmatpush3.bf16.msra.mxu1 %v2981_v44 }
  0x7a   : > { %2729 = vmatprep.subr.bf16.mxu0 %v3178_v0  ;;  %2737 = vmatprep.subr.bf16.mxu1 %v3178_v0 }
  0x7b   : > { %2731 = vmatprep.mubr.msk.bf16.mxu0 %vm3179_vm0, %v3178_v0  ;;  %2739 = vmatprep.mubr.msk.bf16.mxu1 %vm3179_vm0, %v3178_v0 }
  0x7d   : > { %2730 = vmatpush3.bf16.msra.mxu0 %v2982_v45  ;;  %2738 = vmatpush3.bf16.msra.mxu1 %v2983_v46 }
  0x7e   : > { %2743 = vmatprep.subr.bf16.mxu0 %v3178_v0  ;;  %2751 = vmatprep.subr.bf16.mxu1 %v3178_v0 }
  0x80   : > { %2732 = vmatmul.mubr.msk.bf16.vlgmr.msra.gmra.mxu0 %vm250_vm1, %v2434_v47  ;;  %2740 = vmatmul.mubr.msk.bf16.vlgmr.msra.gmra.mxu1 %vm250_vm1, %v2438_v48 }
  0x81   : > { %2744 = vmatpush3.bf16.msra.mxu0 %v2984_v49  ;;  %2752 = vmatpush3.bf16.msra.mxu1 %v2985_v50 }
  0x82   : > { %2745 = vmatprep.subr.bf16.mxu0 %v3178_v0  ;;  %2753 = vmatprep.subr.bf16.mxu1 %v3178_v0 }
  0x83   : > { %2747 = vmatprep.mubr.msk.bf16.mxu0 %vm3179_vm0, %v3178_v0  ;;  %2755 = vmatprep.mubr.msk.bf16.mxu1 %vm3179_vm0, %v3178_v0 }
  0x85   : > { %2746 = vmatpush3.bf16.msra.mxu0 %v2986_v51  ;;  %2754 = vmatpush3.bf16.msra.mxu1 %v2987_v52 }
  0x86   : > { %2759 = vmatprep.subr.bf16.mxu0 %v3178_v0  ;;  %2767 = vmatprep.subr.bf16.mxu1 %v3178_v0 }
  0x88   : > { %2748 = vmatmul.mubr.msk.bf16.vlgmr.msra.gmra.mxu0 %vm250_vm1, %v2445_v53  ;;  %2756 = vmatmul.mubr.msk.bf16.vlgmr.msra.gmra.mxu1 %vm250_vm1, %v2444_v54 }
  0x89   : > { %2760 = vmatpush3.bf16.msra.mxu0 %v2988_v55  ;;  %2768 = vmatpush3.bf16.msra.mxu1 %v2989_v56 }
  0x8a   : > { %2761 = vmatprep.subr.bf16.mxu0 %v3178_v0  ;;  %2769 = vmatprep.subr.bf16.mxu1 %v3178_v0 }
  0x8b   : > { %2763 = vmatprep.mubr.msk.bf16.mxu0 %vm3179_vm0, %v3178_v0  ;;  %2771 = vmatprep.mubr.msk.bf16.mxu1 %vm3179_vm0, %v3178_v0 }
  0x8d   : > { %2762 = vmatpush3.bf16.msra.mxu0 %v2990_v57  ;;  %2770 = vmatpush3.bf16.msra.mxu1 %v2991_v58 }
  0x8e   : > { %2775 = vmatprep.subr.bf16.mxu0 %v3178_v0  ;;  %2783 = vmatprep.subr.bf16.mxu1 %v3178_v0 }
  0x90   : > { %2764 = vmatmul.mubr.msk.bf16.vlgmr.msra.gmra.mxu0 %vm250_vm1, %v2452_v59  ;;  %2772 = vmatmul.mubr.msk.bf16.vlgmr.msra.gmra.mxu1 %vm250_vm1, %v2456_v61 }
  0x91   : > { %2776 = vmatpush3.bf16.msra.mxu0 %v2992_v60  ;;  %2784 = vmatpush3.bf16.msra.mxu1 %v2993_v62 }
  0x92   : > { %2777 = vmatprep.subr.bf16.mxu0 %v3178_v0  ;;  %2785 = vmatprep.subr.bf16.mxu1 %v3178_v0 }
  0x93   : > { %2779 = vmatprep.mubr.msk.bf16.mxu0 %vm3179_vm0, %v3178_v0  ;;  %2787 = vmatprep.mubr.msk.bf16.mxu1 %vm3179_vm0, %v3178_v0 }
  0x95   : > { %2778 = vmatpush3.bf16.msra.mxu0 %v2994_v63  ;;  %2786 = vmatpush3.bf16.msra.mxu1 %v2995_v1 }
  0x96   : > { %2791 = vmatprep.subr.bf16.mxu0 %v3178_v0  ;;  %2799 = vmatprep.subr.bf16.mxu1 %v3178_v0 }
  0x98   : > { %2780 = vmatmul.mubr.msk.bf16.vlgmr.msra.gmra.mxu0 %vm250_vm1, %v2460_v2  ;;  %2788 = vmatmul.mubr.msk.bf16.vlgmr.msra.gmra.mxu1 %vm250_vm1, %v2464_v4  ;;  %v3527_v2 = vld [vmem:[%s3597_s2] ss:$0 sm:$0xff] }
  0x99   : > { %2792 = vmatpush3.bf16.msra.mxu0 %v2996_v3  ;;  %2800 = vmatpush3.bf16.msra.mxu1 %v2997_v5 }
  0x9a   : > { %2793 = vmatprep.subr.bf16.mxu0 %v3178_v0  ;;  %2801 = vmatprep.subr.bf16.mxu1 %v3178_v0 }
  0x9b   : > { %2795 = vmatprep.mubr.msk.bf16.mxu0 %vm3179_vm0, %v3178_v0  ;;  %2803 = vmatprep.mubr.msk.bf16.mxu1 %vm3179_vm0, %v3178_v0 }
  0x9d   : > { %2794 = vmatpush3.bf16.msra.mxu0 %v2998_v6  ;;  %2802 = vmatpush3.bf16.msra.mxu1 %v2999_v7 }
  0x9e   : > { %2807 = vmatprep.subr.bf16.mxu0 %v3178_v0  ;;  %2815 = vmatprep.subr.bf16.mxu1 %v3178_v0 }
  0xa0   : > { %2796 = vmatmul.mubr.msk.bf16.vlgmr.msra.gmra.mxu0 %vm250_vm1, %v2468_v8  ;;  %2804 = vmatmul.mubr.msk.bf16.vlgmr.msra.gmra.mxu1 %vm250_vm1, %v2472_v10 }
  0xa1   : > { %2808 = vmatpush3.bf16.msra.mxu0 %v3000_v9  ;;  %2816 = vmatpush3.bf16.msra.mxu1 %v3001_v11 }
  0xa2   : > { %2809 = vmatprep.subr.bf16.mxu0 %v3178_v0  ;;  %2817 = vmatprep.subr.bf16.mxu1 %v3178_v0 }
  0xa3   : > { %2811 = vmatprep.mubr.msk.bf16.mxu0 %vm3179_vm0, %v3178_v0  ;;  %2819 = vmatprep.mubr.msk.bf16.mxu1 %vm3179_vm0, %v3178_v0 }
  0xa5   : > { %2810 = vmatpush3.bf16.msra.mxu0 %v3002_v12  ;;  %2818 = vmatpush3.bf16.msra.mxu1 %v3003_v13 }
  0xa6   : > { %2823 = vmatprep.subr.bf16.mxu0 %v3178_v0  ;;  %2831 = vmatprep.subr.bf16.mxu1 %v3178_v0 }
  0xa8   : > { %2812 = vmatmul.mubr.msk.bf16.vlgmr.msra.gmra.mxu0 %vm250_vm1, %v2479_v14  ;;  %2820 = vmatmul.mubr.msk.bf16.vlgmr.msra.gmra.mxu1 %vm250_vm1, %v2478_v16 }
  0xa9   : > { %2824 = vmatpush3.bf16.msra.mxu0 %v3004_v15  ;;  %2832 = vmatpush3.bf16.msra.mxu1 %v3005_v17 }
  0xaa   : > { %2825 = vmatprep.subr.bf16.mxu0 %v3178_v0  ;;  %2833 = vmatprep.subr.bf16.mxu1 %v3178_v0 }
  0xab   : > { %2827 = vmatprep.mubr.msk.bf16.mxu0 %vm3179_vm0, %v3178_v0  ;;  %2835 = vmatprep.mubr.msk.bf16.mxu1 %vm3179_vm0, %v3178_v0 }
  0xad   : > { %2826 = vmatpush3.bf16.msra.mxu0 %v3006_v18  ;;  %2834 = vmatpush3.bf16.msra.mxu1 %v3007_v19 }
  0xae   : > { %2839 = vmatprep.subr.bf16.mxu0 %v3178_v0  ;;  %2847 = vmatprep.subr.bf16.mxu1 %v3178_v0 }
  0xb0   : > { %2828 = vmatmul.mubr.msk.bf16.vlgmr.msra.gmra.mxu0 %vm250_vm1, %v2486_v20  ;;  %2836 = vmatmul.mubr.msk.bf16.vlgmr.msra.gmra.mxu1 %vm250_vm1, %v2490_v22 }
  0xb1   : > { %2840 = vmatpush3.bf16.msra.mxu0 %v3008_v21  ;;  %2848 = vmatpush3.bf16.msra.mxu1 %v3009_v23 }
  0xb2   : > { %2841 = vmatprep.subr.bf16.mxu0 %v3178_v0  ;;  %2849 = vmatprep.subr.bf16.mxu1 %v3178_v0 }
  0xb3   : > { %2843 = vmatprep.mubr.msk.bf16.mxu0 %vm3179_vm0, %v3178_v0  ;;  %2851 = vmatprep.mubr.msk.bf16.mxu1 %vm3179_vm0, %v3178_v0 }
  0xb5   : > { %2842 = vmatpush3.bf16.msra.mxu0 %v3010_v24  ;;  %2850 = vmatpush3.bf16.msra.mxu1 %v3011_v25 }
  0xb6   : > { %2855 = vmatprep.subr.bf16.mxu0 %v3178_v0  ;;  %2863 = vmatprep.subr.bf16.mxu1 %v3178_v0 }
  0xb8   : > { %2844 = vmatmul.mubr.msk.bf16.vlgmr.msra.gmra.mxu0 %vm250_vm1, %v2494_v26  ;;  %2852 = vmatmul.mubr.msk.bf16.vlgmr.msra.gmra.mxu1 %vm250_vm1, %v2498_v28 }
  0xb9   : > { %2856 = vmatpush3.bf16.msra.mxu0 %v3012_v27  ;;  %2864 = vmatpush3.bf16.msra.mxu1 %v3013_v29 }
  0xba   : > { %2857 = vmatprep.subr.bf16.mxu0 %v3178_v0  ;;  %2865 = vmatprep.subr.bf16.mxu1 %v3178_v0 }
  0xbb   : > { %2859 = vmatprep.mubr.msk.bf16.mxu0 %vm3179_vm0, %v3178_v0  ;;  %2867 = vmatprep.mubr.msk.bf16.mxu1 %vm3179_vm0, %v3178_v0 }
  0xbd   : > { %2858 = vmatpush3.bf16.msra.mxu0 %v3014_v30  ;;  %2866 = vmatpush3.bf16.msra.mxu1 %v3015_v31 }
  0xc0   : > { %2860 = vmatmul.mubr.msk.bf16.vlgmr.msra.gmra.mxu0 %vm250_vm1, %v2502_v32  ;;  %2868 = vmatmul.mubr.msk.bf16.vlgmr.msra.gmra.mxu1 %vm250_vm1, %v2506_v33 }
 0x108   : > { %v288_v34 = vpop.f32.mrf.mxu0  ;;  %v343_v35 = vpop.f32.mrf.mxu1 }
 0x109   : > { %v344_v0 = vadd.f32 %v343_v35, %v288_v34 }
 0x10a   : > { %v2621_v36 = vpop.f32.mrf.mxu0  ;;  %v2629_v37 = vpop.f32.mrf.mxu1 }
 0x10c   : > { %v291_v38 = vpop.f32.mrf.mxu0  ;;  %v346_v39 = vpop.f32.mrf.mxu1 }
 0x10e   : > { %v2622_v40 = vpop.f32.mrf.mxu0  ;;  %v2630_v41 = vpop.f32.mrf.mxu1 }
 0x110   : > { %v404_v42 = vpop.f32.mrf.mxu0  ;;  %v466_v43 = vpop.f32.mrf.mxu1 }
 0x111   : > { %v410_v47 = vadd.f32 %v404_v42, %v344_v0 }
 0x112   : > { %v2637_v44 = vpop.f32.mrf.mxu0  ;;  %v2645_v45 = vpop.f32.mrf.mxu1 }
 0x113   : > { %v472_v52 = vadd.f32 %v466_v43, %v410_v47 }
 0x114   : > { %v407_v46 = vpop.f32.mrf.mxu0  ;;  %v469_v48 = vpop.f32.mrf.mxu1 }
 0x116   : > { %v2638_v49 = vpop.f32.mrf.mxu0  ;;  %v2646_v50 = vpop.f32.mrf.mxu1 }
 0x118   : > { %v528_v51 = vpop.f32.mrf.mxu0  ;;  %v590_v53 = vpop.f32.mrf.mxu1 }
 0x119   : > { %v534_v55 = vadd.f32 %v528_v51, %v472_v52 }
 0x11a   : > { %v2653_v54 = vpop.f32.mrf.mxu0  ;;  %v2661_v56 = vpop.f32.mrf.mxu1 }
 0x11b   : > { %v596_v60 = vadd.f32 %v590_v53, %v534_v55 }
 0x11c   : > { %v531_v57 = vpop.f32.mrf.mxu0  ;;  %v593_v58 = vpop.f32.mrf.mxu1 }
 0x11e   : > { %v2654_v59 = vpop.f32.mrf.mxu0  ;;  %v2662_v61 = vpop.f32.mrf.mxu1 }
 0x120   : > { %v652_v62 = vpop.f32.mrf.mxu0  ;;  %v714_v1 = vpop.f32.mrf.mxu1 }
 0x121   : > { %v658_v63 = vadd.f32 %v652_v62, %v596_v60 }
 0x122   : > { %v2669_v3 = vpop.f32.mrf.mxu0  ;;  %v2677_v5 = vpop.f32.mrf.mxu1 }
 0x123   : > { %v720_v4 = vadd.f32 %v714_v1, %v658_v63 }
 0x124   : > { %v655_v6 = vpop.f32.mrf.mxu0  ;;  %v717_v8 = vpop.f32.mrf.mxu1 }
 0x125   : > { %v727_v7 = vadd.f32 %v3527_v2, %v720_v4 }
 0x126   : > { %v2670_v9 = vpop.f32.mrf.mxu0  ;;  %v2678_v11 = vpop.f32.mrf.mxu1 }
 0x127   : > { %v2409_v10 = vmul.f32 -1.442695, %v727_v7 }
 0x128   : > { %v798_v12 = vpop.f32.mrf.mxu0  ;;  %v853_v13 = vpop.f32.mrf.mxu1 }
 0x129   : > { %3016 = vpow2.f32 %v2409_v10  ;;  %v854_v23 = vadd.f32 %v853_v13, %v798_v12 }
 0x12a   : > { %v2685_v14 = vpop.f32.mrf.mxu0  ;;  %v2693_v15 = vpop.f32.mrf.mxu1 }
 0x12c   : > { %v801_v16 = vpop.f32.mrf.mxu0  ;;  %v856_v17 = vpop.f32.mrf.mxu1 }
 0x12e   : > { %v2686_v18 = vpop.f32.mrf.mxu0  ;;  %v2694_v19 = vpop.f32.mrf.mxu1 }
 0x130   : > { %v914_v20 = vpop.f32.mrf.mxu0  ;;  %v976_v21 = vpop.f32.mrf.mxu1 }
 0x131   : > { %v920_v26 = vadd.f32 %v914_v20, %v854_v23 }
 0x132   : > { %v2701_v22 = vpop.f32.mrf.mxu0  ;;  %v2709_v24 = vpop.f32.mrf.mxu1 }
 0x133   : > { %v982_v33 = vadd.f32 %v976_v21, %v920_v26 }
 0x134   : > { %v917_v25 = vpop.f32.mrf.mxu0  ;;  %v979_v27 = vpop.f32.mrf.mxu1 }
 0x136   : > { %v3017_v28 = vpop.eup %3016  ;;  %v2702_v29 = vpop.f32.mrf.mxu0 }
 0x137   : > { %v731_v30 = vadd.f32 1.0, %v3017_v28  ;;  %v2710_v31 = vpop.f32.mrf.mxu1 }
 0x138   : > { %v1038_v32 = vpop.f32.mrf.mxu0 }
 0x139   : > { %3018 = vrcp.f32 %v731_v30  ;;  %v1100_v34 = vpop.f32.mrf.mxu1  ;;  %v1044_v36 = vadd.f32 %v1038_v32, %v982_v33 }
 0x13a   : > { %v2717_v35 = vpop.f32.mrf.mxu0 }
 0x13b   : > { %v2725_v37 = vpop.f32.mrf.mxu1  ;;  %v1106_v41 = vadd.f32 %v1100_v34, %v1044_v36 }
 0x13c   : > { %v1041_v38 = vpop.f32.mrf.mxu0 }
 0x13d   : > { %v1103_v39 = vpop.f32.mrf.mxu1 }
 0x13e   : > { %v2718_v40 = vpop.f32.mrf.mxu0 }
 0x13f   : > { %v2726_v42 = vpop.f32.mrf.mxu1 }
 0x140   : > { %v1162_v43 = vpop.f32.mrf.mxu0 }
 0x141   : > { %v1168_v44 = vadd.f32 %v1162_v43, %v1106_v41  ;;  %v1224_v0 = vpop.f32.mrf.mxu1 }
 0x142   : > { %v2733_v45 = vpop.f32.mrf.mxu0 }
 0x143   : > { %v1230_v46 = vadd.f32 %v1224_v0, %v1168_v44  ;;  %v2741_v47 = vpop.f32.mrf.mxu1 }
 0x144   : > { %v1165_v48 = vpop.f32.mrf.mxu0 }
 0x145   : > { %v1231_v49 = vadd.f32 %v3527_v2, %v1230_v46  ;;  %v1227_v50 = vpop.f32.mrf.mxu1 }
 0x146   : > { %v3019_v51 = vpop.eup %3018  ;;  %v2734_v52 = vpop.f32.mrf.mxu0 }
 0x147   : > { %v734_v53 = vmul.f32 %v3019_v51, %v727_v7  ;;  %v2442_v54 = vmul.f32 -1.442695, %v1231_v49  ;;  %v2742_v55 = vpop.f32.mrf.mxu1 }
 0x148   : > { %v1303_v56 = vpop.f32.mrf.mxu0 }
 0x149   : > { %v735_v57 = vpack.c.bf16 %v734_v53, %v734_v53  ;;  %3020 = vpow2.f32 %v2442_v54  ;;  %v1358_v58 = vpop.f32.mrf.mxu1 }
 0x14a   : > { %v2749_v59 = vpop.f32.mrf.mxu0  ;;  %v1359_v6 = vadd.f32 %v1358_v58, %v1303_v56 }
 0x14b   : > { %736 = vst [vmem:[%s3532_s29] sm:$0x3] %v735_v57  ;;  %v2757_v60 = vpop.f32.mrf.mxu1 }
 0x14c   : > { %v1306_v61 = vpop.f32.mrf.mxu0 }
 0x14d   : > { %v1361_v62 = vpop.f32.mrf.mxu1 }
 0x14e   : > { %v2750_v63 = vpop.f32.mrf.mxu0 }
 0x14f   : > { %v2758_v1 = vpop.f32.mrf.mxu1 }
 0x150   : > { %v1419_v3 = vpop.f32.mrf.mxu0 }
 0x151   : > { %v1481_v4 = vpop.f32.mrf.mxu1  ;;  %v1425_v9 = vadd.f32 %v1419_v3, %v1359_v6 }
 0x152   : > { %v2765_v5 = vpop.f32.mrf.mxu0 }
 0x153   : > { %v2773_v7 = vpop.f32.mrf.mxu1  ;;  %v1487_v16 = vadd.f32 %v1481_v4, %v1425_v9 }
 0x154   : > { %v1422_v8 = vpop.f32.mrf.mxu0 }
 0x155   : > { %v1484_v10 = vpop.f32.mrf.mxu1 }
 0x156   : > { %v3021_v11 = vpop.eup %3020  ;;  %v2766_v12 = vpop.f32.mrf.mxu0 }
 0x157   : > { %v1235_v13 = vadd.f32 1.0, %v3021_v11  ;;  %v2774_v14 = vpop.f32.mrf.mxu1 }
 0x158   : > { %v1543_v15 = vpop.f32.mrf.mxu0 }
 0x159   : > { %3022 = vrcp.f32 %v1235_v13  ;;  %v1605_v17 = vpop.f32.mrf.mxu1  ;;  %v1549_v19 = vadd.f32 %v1543_v15, %v1487_v16 }
 0x15a   : > { %v2781_v18 = vpop.f32.mrf.mxu0 }
 0x15b   : > { %v2789_v20 = vpop.f32.mrf.mxu1  ;;  %v1611_v24 = vadd.f32 %v1605_v17, %v1549_v19 }
 0x15c   : > { %v1546_v21 = vpop.f32.mrf.mxu0 }
 0x15d   : > { %v1608_v22 = vpop.f32.mrf.mxu1 }
 0x15e   : > { %v2782_v23 = vpop.f32.mrf.mxu0 }
 0x15f   : > { %v2790_v25 = vpop.f32.mrf.mxu1 }
 0x160   : > { %v1667_v26 = vpop.f32.mrf.mxu0 }
 0x161   : > { %v1673_v27 = vadd.f32 %v1667_v26, %v1611_v24  ;;  %v1729_v28 = vpop.f32.mrf.mxu1 }
 0x162   : > { %v2797_v29 = vpop.f32.mrf.mxu0 }
 0x163   : > { %v1735_v30 = vadd.f32 %v1729_v28, %v1673_v27  ;;  %v2805_v31 = vpop.f32.mrf.mxu1 }
 0x164   : > { %v1670_v32 = vpop.f32.mrf.mxu0 }
 0x165   : > { %v1736_v33 = vadd.f32 %v3527_v2, %v1735_v30  ;;  %v1732_v34 = vpop.f32.mrf.mxu1 }
 0x166   : > { %v3023_v35 = vpop.eup %3022  ;;  %v2798_v36 = vpop.f32.mrf.mxu0 }
 0x167   : > { %v1238_v37 = vmul.f32 %v3023_v35, %v1231_v49  ;;  %v2476_v38 = vmul.f32 -1.442695, %v1736_v33  ;;  %v2806_v39 = vpop.f32.mrf.mxu1 }
 0x168   : > { %v1808_v40 = vpop.f32.mrf.mxu0 }
 0x169   : > { %v1239_v41 = vpack.c.bf16 %v1238_v37, %v1238_v37  ;;  %3024 = vpow2.f32 %v2476_v38  ;;  %v1863_v42 = vpop.f32.mrf.mxu1 }
 0x16a   : > { %v2813_v43 = vpop.f32.mrf.mxu0  ;;  %v1864_v52 = vadd.f32 %v1863_v42, %v1808_v40 }
 0x16b   : > { %2443 = vst [vmem:[%s3532_s29 + $0x2] sm:$0x3] %v1239_v41  ;;  %v2821_v44 = vpop.f32.mrf.mxu1 }
 0x16c   : > { %v1811_v0 = vpop.f32.mrf.mxu0 }
 0x16d   : > { %v1866_v45 = vpop.f32.mrf.mxu1 }
 0x16e   : > { %v2814_v46 = vpop.f32.mrf.mxu0 }
 0x16f   : > { %v2822_v47 = vpop.f32.mrf.mxu1 }
 0x170   : > { %v1924_v48 = vpop.f32.mrf.mxu0 }
 0x171   : > { %v1986_v50 = vpop.f32.mrf.mxu1  ;;  %v1930_v49 = vadd.f32 %v1924_v48, %v1864_v52 }
 0x172   : > { %v2829_v51 = vpop.f32.mrf.mxu0 }
 0x173   : > { %v2837_v53 = vpop.f32.mrf.mxu1  ;;  %v1992_v61 = vadd.f32 %v1986_v50, %v1930_v49 }
 0x174   : > { %v1927_v54 = vpop.f32.mrf.mxu0 }
 0x175   : > { %v1989_v55 = vpop.f32.mrf.mxu1 }
 0x176   : > { %v3025_v56 = vpop.eup %3024  ;;  %v2830_v57 = vpop.f32.mrf.mxu0 }
 0x177   : > { %v1740_v58 = vadd.f32 1.0, %v3025_v56  ;;  %v2838_v59 = vpop.f32.mrf.mxu1 }
 0x178   : > { %v2048_v60 = vpop.f32.mrf.mxu0 }
 0x179   : > { %3026 = vrcp.f32 %v1740_v58  ;;  %v2110_v62 = vpop.f32.mrf.mxu1  ;;  %v2054_v1 = vadd.f32 %v2048_v60, %v1992_v61 }
 0x17a   : > { %v2845_v63 = vpop.f32.mrf.mxu0 }
 0x17b   : > { %v2853_v3 = vpop.f32.mrf.mxu1  ;;  %v2116_v7 = vadd.f32 %v2110_v62, %v2054_v1 }
 0x17c   : > { %v2051_v4 = vpop.f32.mrf.mxu0 }
 0x17d   : > { %v2113_v5 = vpop.f32.mrf.mxu1 }
 0x17e   : > { %v2846_v6 = vpop.f32.mrf.mxu0 }
 0x17f   : > { %v2854_v8 = vpop.f32.mrf.mxu1 }
 0x180   : > { %v2172_v9 = vpop.f32.mrf.mxu0 }
 0x181   : > { %v2178_v10 = vadd.f32 %v2172_v9, %v2116_v7  ;;  %v2234_v11 = vpop.f32.mrf.mxu1 }
 0x182   : > { %v2861_v12 = vpop.f32.mrf.mxu0 }
 0x183   : > { %v2240_v13 = vadd.f32 %v2234_v11, %v2178_v10  ;;  %v2869_v14 = vpop.f32.mrf.mxu1 }
 0x184   : > { %v2175_v15 = vpop.f32.mrf.mxu0 }
 0x185   : > { %v2241_v16 = vadd.f32 %v3527_v2, %v2240_v13  ;;  %v2237_v17 = vpop.f32.mrf.mxu1 }
 0x186   : > { %v3027_v18 = vpop.eup %3026  ;;  %v2862_v19 = vpop.f32.mrf.mxu0 }
 0x187   : > { %v1743_v20 = vmul.f32 %v3027_v18, %v1736_v33  ;;  %v2510_v21 = vmul.f32 -1.442695, %v2241_v16  ;;  %v2870_v22 = vpop.f32.mrf.mxu1 }
 0x189   : > { %v1744_v23 = vpack.c.bf16 %v1743_v20, %v1743_v20  ;;  %3028 = vpow2.f32 %v2510_v21 }
 0x18b   : > { %2477 = vst [vmem:[%s3532_s29 + $0x4] sm:$0x3] %v1744_v23 }
 0x196   : > { %v3029_v24 = vpop.eup %3028 }
 0x197   : > { %v2245_v25 = vadd.f32 1.0, %v3029_v24 }
 0x199   : > { %3030 = vrcp.f32 %v2245_v25 }
 0x1a6   : > { %v3031_v26 = vpop.eup %3030 }
 0x1a7   : > { %v2248_v2 = vmul.f32 %v3031_v26, %v2241_v16 }
 0x1a9   : > { %v2249_v27 = vpack.c.bf16 %v2248_v2, %v2248_v2 }
 0x1ab   : > { %2511 = vst [vmem:[%s3532_s29 + $0x6] sm:$0x3] %v2249_v27 }
 0x1ac   : > { %3099 = shalt.err (!%p3096_p5)
}
 0x1ad   : > { %s3100_s26 = scalar_lea.hbm %s3546_s7, 128  ;;  %s3104_s20 = scalar_lea.hbm %s3598_s3, 256 }
 0x1ae   : > { %p3101_p7 = scmp.ne.s32.totalorder %s3546_s7, %s3100_s26  ;;  %p3105_p9 = scmp.lt.s32.totalorder %s3546_s7, %s3598_s3 }
 0x1af   : > { %p3106_p11 = scmp.lt.s32.totalorder %s3104_s20, %s3100_s26 }
 0x1b0   : > { %p3102_p6 = pnand %p3101_p7, %p3290_p13 }
 0x1b1   : > { %p3107_p12 = por %p3106_p11, %p3105_p9 }
 0x1b2   : > { %p3103_p4 = pneg %p3102_p6 }
 0x1b4   : > { %p3108_p1 = pnand %p3107_p12, %p3103_p4 }
 0x1b6   : > { %3111 = shalt.err (!%p3108_p1)
}
 0x1b7   : > { %s3181_s29 = smov 32   ;;  %s3182_s21 = smov 2  }
 0x1b8   : > { %2877 = dma.vmem_to_hbm [thread:$0]  (%p3290_p13), %s3541_s4, 128, %s3546_s7, %s2253_s10, %s3181_s29, %s3181_s29, %s3182_s21  }
 0x1b9 PF: > { %s2283_s5 = sand.u32 1, %s3150_s12   ;;  %p3610_p8 = scmp.ne.s32.totalorder %s3603_s23, 0 }
 0x1ba   : > { %p3611_p10 = scmp.ge.s32.totalorder %s3170_s17, 2  ;;  %s2284_s6 = scalar_lea.sflag [#allocation4], %s2283_s5 }
 0x1bc   : > { %p2888_p0 = pnand %p3611_p10, %p3610_p8 }
 0x1be   : > { %p2889_p2 = pneg %p2888_p0 }
 0x1c0   : > { %3145 = dma.done.wait (%p2889_p2), %s2284_s6, 128  }
 0x1c1   : > { %3147 = vsyncadd (%p2889_p2), %s2284_s6, 4294967168  ;;  %s20_s17 = sadd.s32 1, %s3170_s17   ;;  %s3612_s12 = smov %s3154_s13 }
 0x1c2   : > { %p17_p3 = scmp.ge.s32.totalorder %s20_s17, 4   ;;  %s3613_s13 = smov %s3158_s14 }
 0x1c3   : > { %s3614_s14 = smov %s3299_s19  ;;  %s3615_s15 = smov %s3166_s16 }
 0x1c4   : > { %s3616_s16 = smov %s3618_s28  ;;  %19 = sbr.rel (!%p17_p3) target bundleno = 7 (0x7), region = 115 }
 0x1c9   :  { %2289 = vsyncpa [#allocation3], 1 }
 0x1ca   :  { %2291 = vsyncpa [#allocation3 + $0x1], 1 }
 0x1cb   :  { %2292 = vsyncpa [#allocation6], 1 }
 0x1cc   :  { %2293 = vsyncpa [#allocation4], 1 }
 0x1cd   :  { %2295 = vsyncpa [#allocation4 + $0x1], 1 }

</bundles_post_ra>
